<compile_context>
chip_gen: v7x
topology: tpu7x:2x2x1
jax: 0.10.0
libtpu: 0.0.40
codegen_flags: <defaults>
</compile_context>

<pallas_src>
import functools

import jax
import jax.numpy as jnp
from jax import lax
from jax.experimental import pallas as pl
from jax.experimental.pallas import tpu as pltpu

K_FEATURES = 50176          # 224 * 224
N_CLASSES = 10
TILE_K = 25088              # 50176 / 25088 = 2 grid steps; 25088 = 196 * 128

NUM_K_SPLITS = 2            # v7x: one K half per TensorCore
K_SPLIT = K_FEATURES // NUM_K_SPLITS

# (B, K_tile) . (N, K_tile) -> (B, N)  (contract on the last dim of both: "bk,nk->bn")
_NT_DIMS = (((1,), (1,)), ((), ()))

_VMEM_LIMIT_BYTES = 32 * 1024 * 1024   # explicit scoped-VMEM budget, safe on v5e/v6e/v7x


def _cost_estimate(batch):
    return pl.CostEstimate(
        flops=2 * batch * K_FEATURES * N_CLASSES,
        bytes_accessed=4 * (batch * K_FEATURES + N_CLASSES * K_FEATURES + batch * N_CLASSES),
        transcendentals=batch * N_CLASSES,
    )


# ---------------------------------------------------------------------------
# Fused single-core path (v5e / v6e): matmul + bias + log_softmax in one call.
# ---------------------------------------------------------------------------
def _linear_logsoftmax_kernel(x_ref, w_ref, b_ref, o_ref):
    k = pl.program_id(0)

    @pl.when(k == 0)
    def _init():
        # Fold the bias into the accumulator init (saves the add in finalize).
        o_ref[...] = jnp.broadcast_to(b_ref[...], o_ref.shape)

    # Partial x @ W.T over this K tile, accumulated into the VMEM-resident
    # output block (its BlockSpec maps every k to the same block).
    o_ref[...] += lax.dot_general(
        x_ref[...], w_ref[...],
        dimension_numbers=_NT_DIMS,
        preferred_element_type=jnp.float32,
    )

    @pl.when(k == pl.num_programs(0) - 1)
    def _finalize():
        logits = o_ref[...]                                   # (B, N_CLASSES), bias included
        m = jnp.max(logits, axis=1, keepdims=True)
        lse = m + jnp.log(jnp.sum(jnp.exp(logits - m), axis=1, keepdims=True))
        o_ref[...] = logits - lse


def _forward_fused(x, w, b2d):
    batch = x.shape[0]
    return pl.pallas_call(
        _linear_logsoftmax_kernel,
        out_shape=jax.ShapeDtypeStruct((batch, N_CLASSES), jnp.float32),
        grid_spec=pltpu.PrefetchScalarGridSpec(
            num_scalar_prefetch=0,
            grid=(K_FEATURES // TILE_K,),
            in_specs=[
                pl.BlockSpec((batch, TILE_K), lambda k: (0, k)),          # x tile
                pl.BlockSpec((N_CLASSES, TILE_K), lambda k: (0, k)),      # weight tile (N, K)
                pl.BlockSpec((1, N_CLASSES), lambda k: (0, 0)),           # bias (constant block)
            ],
            out_specs=pl.BlockSpec((batch, N_CLASSES), lambda k: (0, 0)),
        ),
        compiler_params=pltpu.CompilerParams(
            dimension_semantics=("arbitrary",),       # K is a reduction axis
            vmem_limit_bytes=_VMEM_LIMIT_BYTES,
        ),
        cost_estimate=_cost_estimate(batch),
    )(x, w, b2d)


# ---------------------------------------------------------------------------
# v7x path: split K across the two TensorCores; combine partials in the wrapper.
# ---------------------------------------------------------------------------
def _partial_linear_kernel(x_ref, w_ref, o_ref):
    # One K half per grid point ("parallel" axis -> one per TensorCore on v7x).
    o_ref[...] = lax.dot_general(
        x_ref[...], w_ref[...],
        dimension_numbers=_NT_DIMS,
        preferred_element_type=jnp.float32,
    )


def _forward_split(x, w, b):
    batch = x.shape[0]
    partials = pl.pallas_call(
        _partial_linear_kernel,
        out_shape=jax.ShapeDtypeStruct((NUM_K_SPLITS, batch, N_CLASSES), jnp.float32),
        grid_spec=pltpu.PrefetchScalarGridSpec(
            num_scalar_prefetch=0,
            grid=(NUM_K_SPLITS,),
            in_specs=[
                pl.BlockSpec((batch, K_SPLIT), lambda c: (0, c)),         # x half
                pl.BlockSpec((N_CLASSES, K_SPLIT), lambda c: (0, c)),     # weight half (N, K/2)
            ],
            out_specs=pl.BlockSpec((None, batch, N_CLASSES), lambda c: (c, 0, 0)),
        ),
        compiler_params=pltpu.CompilerParams(
            dimension_semantics=("parallel",),        # shard K halves across TCs
            vmem_limit_bytes=_VMEM_LIMIT_BYTES,
        ),
        cost_estimate=_cost_estimate(batch),
    )(x, w)
    logits = jnp.sum(partials, axis=0) + b[None, :]           # tiny (B, 10) combine
    return jax.nn.log_softmax(logits, axis=1)


# ---------------------------------------------------------------------------
# Dispatch
# ---------------------------------------------------------------------------
def _num_tensorcores_per_chip():
    try:
        kind = jax.devices()[0].device_kind.lower()
    except Exception:
        return 1
    return 2 if ("v7" in kind or "7x" in kind) else 1


@functools.partial(jax.jit, static_argnames=("num_cores",))
def _forward_impl(x, w, b, num_cores):
    if num_cores >= 2:
        return _forward_split(x, w, b)
    return _forward_fused(x, w, b.reshape(1, N_CLASSES))


def derived_model4_forward(x, w, b):
    """x: (B, 50176) f32, w: (10, 50176) f32 (PyTorch layout), b: (10,) f32
    -> (B, 10) log-probabilities."""
    B, K = x.shape
    N, K2 = w.shape
    assert K == K_FEATURES and K2 == K_FEATURES and N == N_CLASSES
    assert K % TILE_K == 0 and K % NUM_K_SPLITS == 0
    return _forward_impl(x, w, b, num_cores=_num_tensorcores_per_chip())


if __name__ == "__main__":
    key = jax.random.PRNGKey(0)
    kx, kw, kb = jax.random.split(key, 3)

    B = 2
    # PyTorch-style default init for nn.Linear(50176, 10): U(-1/sqrt(K), 1/sqrt(K))
    bound = 1.0 / (K_FEATURES ** 0.5)
    x = jax.random.normal(kx, (B, K_FEATURES), jnp.float32)
    w = jax.random.uniform(kw, (N_CLASSES, K_FEATURES), jnp.float32, -bound, bound)
    b = jax.random.uniform(kb, (N_CLASSES,), jnp.float32, -bound, bound)

    out = derived_model4_forward(x, w, b)
    out = jax.block_until_ready(out)

    # Reference check in plain JAX (PyTorch semantics: x @ W.T + b, then log_softmax).
    ref = jax.nn.log_softmax(x @ w.T + b, axis=1)
    assert out.shape == (B, N_CLASSES)
    assert jnp.allclose(out, ref, atol=1e-4, rtol=1e-4), "mismatch vs reference"

    print("KERNEL_OK")
</pallas_src>

<mosaic_0001>
module attributes {stable_mosaic.version = 11 : i64} {
  func.func @_linear_logsoftmax_kernel(%arg0: i32, %arg1: memref<2x25088xf32, #tpu.memory_space<vmem>>, %arg2: memref<10x25088xf32, #tpu.memory_space<vmem>>, %arg3: memref<1x10xf32, #tpu.memory_space<vmem>>, %arg4: memref<2x10xf32, #tpu.memory_space<vmem>>) attributes {dimension_semantics = [#tpu.dimension_semantics<arbitrary>], iteration_bounds = array<i64: 2>, scalar_prefetch = 0 : i64, scratch_operands = 0 : i64, tpu.core_type = #tpu.core_type<tc>, window_params = [{transform_indices = @transform_0, window_bounds = array<i64: 2, 25088>}, {transform_indices = @transform_1, window_bounds = array<i64: 10, 25088>}, {pipeline_mode = #tpu.pipeline_mode<synchronous>, transform_indices = @transform_2, window_bounds = array<i64: 1, 10>}, {pipeline_mode = #tpu.pipeline_mode<synchronous>, transform_indices = @transform_3, window_bounds = array<i64: 2, 10>}]} {
    %c0_i32 = arith.constant 0 : i32
    %0 = arith.cmpi eq, %arg0, %c0_i32 : i32
    %1 = arith.extui %0 : i1 to i32
    %c0_i32_0 = arith.constant 0 : i32
    %2 = arith.cmpi ne, %1, %c0_i32_0 : i32
    scf.if %2 {
      %c0_9 = arith.constant 0 : index
      %c0_10 = arith.constant 0 : index
      %12 = vector.load %arg3[%c0_9, %c0_10] : memref<1x10xf32, #tpu.memory_space<vmem>>, vector<1x10xf32>
      %13 = vector.shape_cast %12 : vector<1x10xf32> to vector<1x10xf32>
      %14 = vector.broadcast %13 : vector<1x10xf32> to vector<2x10xf32>
      %c0_11 = arith.constant 0 : index
      %c0_12 = arith.constant 0 : index
      %15 = vector.load %arg4[%c0_11, %c0_12] : memref<2x10xf32, #tpu.memory_space<vmem>>, vector<2x10xf32>
      tpu.vector_store %arg4[%c0_11, %c0_12], %14 {strides = array<i32>} : memref<2x10xf32, #tpu.memory_space<vmem>>, vector<2x10xf32>,
    } else {
    }
    %c0 = arith.constant 0 : index
    %c0_1 = arith.constant 0 : index
    %3 = vector.load %arg4[%c0, %c0_1] : memref<2x10xf32, #tpu.memory_space<vmem>>, vector<2x10xf32>
    %c0_2 = arith.constant 0 : index
    %c0_3 = arith.constant 0 : index
    %4 = vector.load %arg1[%c0_2, %c0_3] : memref<2x25088xf32, #tpu.memory_space<vmem>>, vector<2x25088xf32>
    %c0_4 = arith.constant 0 : index
    %c0_5 = arith.constant 0 : index
    %5 = vector.load %arg2[%c0_4, %c0_5] : memref<10x25088xf32, #tpu.memory_space<vmem>>, vector<10x25088xf32>
    %cst = arith.constant dense<0.000000e+00> : vector<2x10xf32>
    %6 = tpu.matmul %4, %5, %cst {dimension_numbers = #tpu.dot_dimension_numbers<[1], [1], [0], [0], [0, 0, 1, 0], [], []>} : vector<2x25088xf32>, vector<10x25088xf32>, vector<2x10xf32> -> vector<2x10xf32>
    %7 = arith.addf %3, %6 : vector<2x10xf32>
    %c0_6 = arith.constant 0 : index
    %c0_7 = arith.constant 0 : index
    %8 = vector.load %arg4[%c0_6, %c0_7] : memref<2x10xf32, #tpu.memory_space<vmem>>, vector<2x10xf32>
    tpu.vector_store %arg4[%c0_6, %c0_7], %7 {strides = array<i32>} : memref<2x10xf32, #tpu.memory_space<vmem>>, vector<2x10xf32>,
    %c1_i32 = arith.constant 1 : i32
    %9 = arith.cmpi eq, %arg0, %c1_i32 : i32
    %10 = arith.extui %9 : i1 to i32
    %c0_i32_8 = arith.constant 0 : i32
    %11 = arith.cmpi ne, %10, %c0_i32_8 : i32
    scf.if %11 {
      %c0_9 = arith.constant 0 : index
      %c0_10 = arith.constant 0 : index
      %12 = vector.load %arg4[%c0_9, %c0_10] : memref<2x10xf32, #tpu.memory_space<vmem>>, vector<2x10xf32>
      %cst_11 = arith.constant dense<0xFF800000> : vector<2xf32>
      %13 = vector.multi_reduction <maximumf>, %12, %cst_11 [1] : vector<2x10xf32> to vector<2xf32>
      %14 = vector.shape_cast %13 : vector<2xf32> to vector<2x1xf32>
      %15 = vector.broadcast %14 : vector<2x1xf32> to vector<2x10xf32>
      %16 = arith.subf %12, %15 : vector<2x10xf32>
      %17 = math.exp %16 : vector<2x10xf32>
      %cst_12 = arith.constant dense<0.000000e+00> : vector<2xf32>
      %18 = vector.multi_reduction <add>, %17, %cst_12 [1] : vector<2x10xf32> to vector<2xf32>
      %19 = vector.shape_cast %18 : vector<2xf32> to vector<2x1xf32>
      %20 = math.log %19 : vector<2x1xf32>
      %21 = arith.addf %14, %20 : vector<2x1xf32>
      %22 = vector.broadcast %21 : vector<2x1xf32> to vector<2x10xf32>
      %23 = arith.subf %12, %22 : vector<2x10xf32>
      %c0_13 = arith.constant 0 : index
      %c0_14 = arith.constant 0 : index
      %24 = vector.load %arg4[%c0_13, %c0_14] : memref<2x10xf32, #tpu.memory_space<vmem>>, vector<2x10xf32>
      tpu.vector_store %arg4[%c0_13, %c0_14], %23 {strides = array<i32>} : memref<2x10xf32, #tpu.memory_space<vmem>>, vector<2x10xf32>,
    } else {
    }
    return
  }
  func.func @transform_0(%arg0: i32) -> (i32, i32) {
    %c0_i32 = arith.constant 0 : i32
    %c0_i32_0 = arith.constant 0 : i32
    return %c0_i32, %arg0 : i32, i32
  }
  func.func @transform_1(%arg0: i32) -> (i32, i32) {
    %c0_i32 = arith.constant 0 : i32
    %c0_i32_0 = arith.constant 0 : i32
    return %c0_i32, %arg0 : i32, i32
  }
  func.func @transform_2(%arg0: i32) -> (i32, i32) {
    %c0_i32 = arith.constant 0 : i32
    %c0_i32_0 = arith.constant 0 : i32
    %c0_i32_1 = arith.constant 0 : i32
    return %c0_i32, %c0_i32_0 : i32, i32
  }
  func.func @transform_3(%arg0: i32) -> (i32, i32) {
    %c0_i32 = arith.constant 0 : i32
    %c0_i32_0 = arith.constant 0 : i32
    %c0_i32_1 = arith.constant 0 : i32
    return %c0_i32, %c0_i32_0 : i32, i32
  }
}

</mosaic_0001>

<bundles_post_ra>
// kernel: _forward_impl.1
= control target key start
LH: loop header
LB: loop body
LE: loop exit
PB: predicated region body
PF: predicated region fallthrough
CT: control target
= control target key end

     0   :  { %8 = vsyncpa [#allocation3], 0  ;;  %s10215_s0 = inlined_call_operand.hbm [shape: f32[2,50176], index: 0, kind: input, shape index: {}]   ;;  %s10216_s1 = inlined_call_operand.hbm [shape: f32[10,50176], index: 1, kind: input, shape index: {}]   ;;  %s10217_s2 = inlined_call_operand.hbm [shape: f32[1,10], index: 2, kind: input, shape index: {}]   ;;  %s10218_s3 = inlined_call_operand.hbm [shape: f32[2,10], index: 3, kind: output, shape index: {}]  }
   0x1   :  { %10 = vsyncpa [#allocation3 + $0x1], 0 }
   0x2   :  { %11 = vsyncpa [#allocation6], 0 }
   0x3   :  { %13 = vsyncpa [#allocation6 + $0x1], 0 }
   0x4   :  { %14 = vsyncpa [#allocation4], 0  ;;  %s9455_s12 = smov 0   ;;  %s9457_s13 = smov 0  }
   0x5   :  { %s9459_s14 = smov 0   ;;  %s9461_s15 = smov 0  }
   0x6 LB: > { %s9474_s16 = sadd.s32 4294967295, %s9425_s15   ;;  %s9477_s17 = sadd.s32 1, %s9425_s15   ;;  %s9425_s15 = sphi %s9461_s15, %s10236_s15   ;;  %s9421_s14 = sphi %s9459_s14, %s10235_s14   ;;  %s9417_s13 = sphi %s9457_s13, %s10234_s13   ;;  %s9413_s12 = sphi %s9455_s12, %s10233_s12  }
   0x7   : > { %s24_s18 = ssub.s32 %s9425_s15, %s9477_s17  ;;  %s27_s19 = sadd.s32 1, %s9421_s14 }
   0x8   : > { %p25_p0 = scmp.eq.s32.totalorder %s24_s18, 0  ;;  %p34_p1 = scmp.ne.s32.totalorder %s9421_s14, %s9417_s13 }
   0x9   : > { %p40_p2 = scmp.ne.s32.totalorder %s9417_s13, %s9413_s12  ;;  %p10219_p3 = scmp.eq.s32.totalorder %s9474_s16, 0 }
   0xa   : > { %s9487_s20 = scalar_select %p25_p0, %s9421_s14, %s27_s19  }
   0xb   : > { %p9491_p4 = por %p10219_p3, %p40_p2  ;;  %p8734_p5 = scmp.ge.s32.totalorder %s9425_s15, 1 }
   0xc   : > { %p119_p6 = scmp.lt.s32.totalorder %s9425_s15, 3  ;;  %s9427_s23 = smov [#allocation7]  }
   0xd   : > { %s10223_s21 = scalar_select %p9491_p4, 1, 0 }
   0xe   : > { %p9498_p8 = pnand %p8734_p5, %p119_p6  ;;  %s132_s24 = sshll.u32 %s9427_s23, 4  ;;  %s133_s24 = int_to_ptr.vmem [resolvable:$true] %s132_s24 }
   0xf   : > { %p35_p9 = scmp.eq.s32.totalorder %s9425_s15, 0  ;;  %p9170_p11 = scmp.lt.s32.totalorder %s9425_s15, 2 }
  0x10   : > { %s10224_s22 = scalar_select %p9498_p8, 1, 0 }
  0x11   : > { %p9158_p10 = pneg %p9498_p8  ;;  %p36_p12 = por %p35_p9, %p34_p1 }
  0x12   : > { %s9510_s25 = sand.u32 1, %s9421_s14   ;;  %s8748_s29 = smul.u32 6272, %s9425_s15 }
  0x13   : > { %p9514_p13 = pnand %p9158_p10, %p10219_p3  ;;  %s9142_s27 = smul.u32 392, %s9510_s25 }
  0x14   : > { %p9519_p0 = pnand %p9170_p11, %p36_p12  ;;  %s9265_s5 = scalar_lea.hbm %s10217_s2, 16 }
  0x15   : > { %p9266_p1 = scmp.ne.s32.totalorder %s10217_s2, %s9265_s5  ;;  %p9267_p2 = pneg %p9514_p13 }
  0x16   : > { %s10226_s28 = scalar_select %p9519_p0, 1, 0 }
  0x17   : > { %p9268_p5 = pnand %p9267_p2, %p9266_p1  ;;  %p9272_p9 = scmp.lt.u32.totalorder %s9265_s5, %s10217_s2 }
  0x19   : > { %p9269_p6 = pneg %p9268_p5 }
  0x1b   : > { %p9274_p10 = pnand %p9272_p9, %p9269_p6 }
  0x1d   : > { %9277 = shalt.err (!%p9274_p10)
}
  0x1e   : > { %s9278_s10 = scalar_lea.vmem %s133_s24, 16  ;;  %s9285_s11 = scalar_lea.vmem %s133_s24, 32 }
  0x1f   : > { %p9279_p11 = scmp.ne.s32.totalorder %s133_s24, %s9278_s10  ;;  %p9286_p3 = scmp.lt.s32.totalorder %s133_s24, %s133_s24 }
  0x20   : > { %p9287_p4 = scmp.lt.s32.totalorder %s9285_s11, %s9278_s10 }
  0x21   : > { %p9281_p12 = pnand %p9279_p11, %p9267_p2 }
  0x22   : > { %p9288_p8 = por %p9287_p4, %p9286_p3 }
  0x23   : > { %p9282_p7 = pneg %p9281_p12 }
  0x25   : > { %p9289_p0 = pnand %p9288_p8, %p9282_p7 }
  0x27   : > { %9292 = shalt.err (!%p9289_p0)
}
  0x28   : > { %9161 = dma.hbm_to_vmem [thread:$0]  (!%p9514_p13), %s10217_s2, 16, %s133_s24, [#allocation6]  }
  0x29   : > { %s9543_s30 = scalar_lea.hbm %s10215_s0, %s8748_s29  ;;  %s147_s4 = scalar_lea.vmem [#allocation2], %s9142_s27 }
  0x2a   : > { %s155_s5 = sshll.u32 %s147_s4, 4  ;;  %s9143_s26 = smul.u32 3136, %s9510_s25  ;;  %s9545_s5 = int_to_ptr.vmem [resolvable:$true] %s155_s5 }
  0x2b   : > { %s144_s6 = scalar_lea.sflag [#allocation3], %s9510_s25  ;;  %s9293_s7 = scalar_lea.hbm %s9543_s30, 6272 }
  0x2c   : > { %p9294_p3 = scmp.ne.s32.totalorder %s9543_s30, %s9293_s7  ;;  %p10227_p4 = scmp.ne.s32.totalorder %s10226_s28, 0 }
  0x2d   : > { %s9298_s8 = scalar_lea.hbm %s10215_s0, 12544  ;;  %p9299_p0 = scmp.lt.u32.totalorder %s9543_s30, %s10215_s0 }
  0x2e   : > { %p9295_p7 = pneg %p10227_p4  ;;  %p9300_p1 = scmp.lt.u32.totalorder %s9298_s8, %s9293_s7 }
  0x2f   : > { %p9302_p5 = scmp.lt.u32.totalorder %s9293_s7, %s9543_s30 }
  0x30   : > { %p9296_p8 = pnand %p9295_p7, %p9294_p3  ;;  %p9301_p2 = por %p9300_p1, %p9299_p0 }
  0x32   : > { %p9297_p13 = pneg %p9296_p8  ;;  %p9303_p6 = por %p9302_p5, %p9301_p2 }
  0x34   : > { %p9304_p9 = pnand %p9303_p6, %p9297_p13 }
  0x36   : > { %9307 = shalt.err (!%p9304_p9)
}
  0x37   : > { %s9308_s27 = scalar_lea.vmem %s9545_s5, 6272  ;;  %s9428_s11 = smov [#allocation2]  }
  0x38   : > { %p9309_p10 = scmp.ne.s32.totalorder %s9545_s5, %s9308_s27  ;;  %s9313_s12 = sshll.u32 %s9428_s11, 4  ;;  %s9314_s12 = int_to_ptr.vmem [resolvable:$false] %s9313_s12 }
  0x39   : > { %s9315_s18 = scalar_lea.vmem %s9314_s12, 12544  ;;  %p9316_p3 = scmp.lt.s32.totalorder %s9545_s5, %s9314_s12 }
  0x3a   : > { %p9311_p11 = pnand %p9309_p10, %p9295_p7  ;;  %p9317_p8 = scmp.lt.s32.totalorder %s9315_s18, %s9308_s27 }
  0x3c   : > { %p9312_p12 = pneg %p9311_p11  ;;  %p9318_p0 = por %p9317_p8, %p9316_p3 }
  0x3e   : > { %p9319_p1 = pnand %p9318_p0, %p9312_p12 }
  0x40   : > { %9322 = shalt.err (!%p9319_p1)
}
  0x41   : > { %9165 = dma.hbm_to_vmem [thread:$0]  (!%p10227_p4), %s9543_s30, 6272, %s9545_s5, %s144_s6  }
  0x42   : > { %s162_s19 = sand.u32 1, %s9425_s15   ;;  %s166_s23 = scalar_lea.vmem [#allocation5], %s9143_s26 }
  0x43   : > { %s173_s4 = sshll.u32 %s166_s23, 4  ;;  %s8749_s7 = smul.u32 25088, %s9425_s15  ;;  %s9577_s4 = int_to_ptr.vmem [resolvable:$true] %s173_s4 }
  0x44   : > { %s9585_s9 = scalar_lea.sflag [#allocation6], %s162_s19  ;;  %s9328_s15 = scalar_lea.hbm %s10216_s1, 100352 }
  0x45   : > { %s9583_s8 = scalar_lea.hbm %s10216_s1, %s8749_s7 }
  0x46   : > { %s9323_s10 = scalar_lea.hbm %s9583_s8, 50176  ;;  %p9329_p6 = scmp.lt.u32.totalorder %s9583_s8, %s10216_s1 }
  0x47   : > { %p9324_p13 = scmp.ne.s32.totalorder %s9583_s8, %s9323_s10  ;;  %p9330_p9 = scmp.lt.u32.totalorder %s9328_s15, %s9323_s10 }
  0x48   : > { %p9332_p11 = scmp.lt.u32.totalorder %s9323_s10, %s9583_s8 }
  0x49   : > { %p9326_p2 = pnand %p9324_p13, %p9295_p7  ;;  %p9331_p10 = por %p9330_p9, %p9329_p6 }
  0x4b   : > { %p9327_p5 = pneg %p9326_p2  ;;  %p9333_p12 = por %p9332_p11, %p9331_p10 }
  0x4d   : > { %p9334_p3 = pnand %p9333_p12, %p9327_p5 }
  0x4f   : > { %9337 = shalt.err (!%p9334_p3)
}
  0x50   : > { %s9338_s6 = scalar_lea.vmem %s9577_s4, 50176  ;;  %s9429_s27 = smov [#allocation5]  }
  0x51   : > { %p9339_p8 = scmp.ne.s32.totalorder %s9577_s4, %s9338_s6  ;;  %s9343_s11 = sshll.u32 %s9429_s27, 4  ;;  %s9344_s11 = int_to_ptr.vmem [resolvable:$false] %s9343_s11 }
  0x52   : > { %s9345_s12 = scalar_lea.vmem %s9344_s11, 100352  ;;  %p9346_p13 = scmp.lt.s32.totalorder %s9577_s4, %s9344_s11 }
  0x53   : > { %p9341_p0 = pnand %p9339_p8, %p9295_p7  ;;  %p9347_p2 = scmp.lt.s32.totalorder %s9345_s12, %s9338_s6 }
  0x55   : > { %p9342_p1 = pneg %p9341_p0  ;;  %p9348_p6 = por %p9347_p2, %p9346_p13 }
  0x57   : > { %p9349_p9 = pnand %p9348_p6, %p9342_p1 }
  0x59   : > { %9352 = shalt.err (!%p9349_p9)
}
  0x5a   : > { %s9430_s18 = smov 50176   ;;  %s9431_s19 = smov 25088  }
  0x5b   : > { %s9432_s23 = smov 1568   ;;  %p10228_p7 = scmp.ne.s32.totalorder %s10224_s22, 0 }
  0x5c   : > { %9168 = dma.hbm_to_vmem [thread:$0]  (!%p10227_p4), %s9583_s8, 50176, %s9577_s4, %s9585_s9, %s9430_s18, %s9431_s19, %s9432_s23  }
  0x5d   : > { %185 = sbr.rel (%p10228_p7) target bundleno = 1083 (0x43b), region = 32  ;;  %s187_s7 = sand.u32 (!%p10228_p7), 1, %s9417_s13  }
  0x5e   : > { %s9144_s24 = smul.u32 (!%p10228_p7), 392, %s187_s7  ;;  %s188_s29 = scalar_lea.sflag (!%p10228_p7), [#allocation3], %s187_s7 }
  0x5f   : > { %p10229_p5 = scmp.ne.s32.totalorder (!%p10228_p7), %s10223_s21, 0 }
  0x60   : > { %s9614_s10 = scalar_lea.vmem (!%p10228_p7), [#allocation2], %s9144_s24 }
  0x64   : > { %9396 = dma.done.wait (%p10229_p5), %s188_s29, 6272  }
  0x65   : > { %9398 = vsyncadd (%p10229_p5), %s188_s29, 4294961024  ;;  %s196_s25 = sand.u32 1, %s9474_s16   ;;  %s9145_s28 = smul.u32 3136, %s187_s7 }
  0x66   : > { %s197_s4 = scalar_lea.sflag [#allocation6], %s196_s25 }
  0x67   : > { %s9621_s8 = scalar_lea.vmem [#allocation5], %s9145_s28 }
  0x68   : > { %9400 = dma.done.wait (%p10229_p5), %s197_s4, 50176  }
  0x69   : > { %9402 = vsyncadd (%p10229_p5), %s197_s4, 4294917120  ;;  %p10230_p4 = scmp.eq.s32.totalorder %s9474_s16, 0 }
  0x6b   : > { %9404 = dma.done.wait (%p10230_p4), [#allocation6], 16   ;;  %p10231_p10 = pmov %p10230_p4 }
  0x6c   : > { %p10232_p11 = scmp.ne.s32.totalorder %s9474_s16, 0 }
  0x6d   : > { %9406 = vsyncadd (%p10231_p10), [#allocation6], 4294967280  ;;  %v8742_v0 = vld [vmem:[#allocation7] ss:$0 sm:$0xff] (!%p10232_p11)  ;;  %vm240_vm0 = vcmask (!%p10232_p11), 74752  }
  0x6e   : > { %232 = sbr.rel (%p10232_p11) target bundleno = 117 (0x75), region = 48  ;;  %241 = vst.msk [vmem:[#allocation8] sm:$0x3] (!%p10232_p11), %vm240_vm0, %v8742_v0 }
  0x75 PF: > { %v293_v1 = vld [vmem:[%s9621_s8 + $0x8] sm:$0xff]  ;;  %v292_v3 = vld [vmem:[%s9621_s8] sm:$0xff]  ;;  %v737_v4 = vlaneseq  ;;  %v295_v7 = vld [vmem:[%s9621_s8 + $0x18] sm:$0xff]  ;;  %v9433_v9 = vmov 1983009808   ;;  %vm8623_vm1 = vcmask 74752  }
  0x76   : > { %v489_v2 = vld [vmem:[%s9621_s8 + $0x628] sm:$0x3]  ;;  %v488_v6 = vld [vmem:[%s9621_s8 + $0x620] sm:$0x3]  ;;  %v491_v8 = vld [vmem:[%s9621_s8 + $0x638] sm:$0x3]  ;;  %v735_v10 = vunpack.c.l.s4 %v9433_v9 }
  0x77   : > { %v8750_v5 = vpack.c.bf16 %v489_v2, %v293_v1  ;;  %v8752_v11 = vpack.c.bf16 %v488_v6, %v292_v3  ;;  %v8754_v12 = vpack.c.bf16 %v491_v8, %v295_v7  ;;  %v294_v13 = vld [vmem:[%s9621_s8 + $0x10] sm:$0xff]  ;;  %v738_v16 = vshrl.u32 %v737_v4, 7  ;;  %v297_v20 = vld [vmem:[%s9621_s8 + $0x28] sm:$0xff]  ;;  %v299_v23 = vld [vmem:[%s9621_s8 + $0x38] sm:$0xff]  ;;  %p8743_p12 = scmp.ne.s32.totalorder %s9474_s16, 1 }
  0x78   : > { %v490_v14 = vld [vmem:[%s9621_s8 + $0x630] sm:$0x3]  ;;  %v736_v18 = vunpack.c.0.s8 %v735_v10  ;;  %v493_v21 = vld [vmem:[%s9621_s8 + $0x648] sm:$0x3]  ;;  %v495_v24 = vld [vmem:[%s9621_s8 + $0x658] sm:$0x3] }
  0x79   : > { %v243_v15 = vld [vmem:[%s9614_s10] sm:$0xff]  ;;  %8751 = vmatprep.subr.bf16.mxu0 %v8750_v5  ;;  %v8756_v17 = vpack.c.bf16 %v490_v14, %v294_v13  ;;  %8755 = vmatprep.subr.bf16.mxu1 %v8754_v12  ;;  %v8758_v22 = vpack.c.bf16 %v493_v21, %v297_v20  ;;  %v296_v26 = vld [vmem:[%s9621_s8 + $0x20] sm:$0xff]  ;;  %v8762_v27 = vpack.c.bf16 %v495_v24, %v299_v23  ;;  %v301_v36 = vld [vmem:[%s9621_s8 + $0x48] sm:$0xff] }
  0x7a   : > { %v733_v19 = vcombine.high %v243_v15, %v243_v15  ;;  %8753 = vmatpush1.bf16.xpose.msra.mxu0 %v8752_v11  ;;  %v9646_v25 = vsub.s32 %v736_v18, %v738_v16  ;;  %v244_v28 = vld [vmem:[%s9614_s10 + $0x8] sm:$0xff]  ;;  %v298_v30 = vld [vmem:[%s9621_s8 + $0x30] sm:$0xff]  ;;  %v497_v37 = vld [vmem:[%s9621_s8 + $0x668] sm:$0x3] }
  0x7b   : > { %8757 = vmatpush1.bf16.xpose.msra.mxu1 %v8756_v17  ;;  %8759 = vmatprep.subr.bf16.mxu0 %v8758_v22  ;;  %v492_v29 = vld [vmem:[%s9621_s8 + $0x640] sm:$0x3]  ;;  %v494_v31 = vld [vmem:[%s9621_s8 + $0x650] sm:$0x3]  ;;  %v750_v32 = vcombine.high %v244_v28, %v244_v28  ;;  %v303_v39 = vld [vmem:[%s9621_s8 + $0x58] sm:$0xff]  ;;  %v8766_v47 = vpack.c.bf16 %v497_v37, %v301_v36 }
  0x7c   : > { %v740_v33 = vrot.slane %v243_v15, %v9646_v25  ;;  %v747_v34 = vrot.slane %v733_v19, %v9646_v25  ;;  %8763 = vmatprep.subr.bf16.mxu1 %v8762_v27  ;;  %v757_v35 = vrot.slane %v244_v28, %v9646_v25  ;;  %v499_v40 = vld [vmem:[%s9621_s8 + $0x678] sm:$0x3]  ;;  %v245_v41 = vld [vmem:[%s9614_s10 + $0x10] sm:$0xff]  ;;  %v8760_v44 = vpack.c.bf16 %v492_v29, %v296_v26  ;;  %v302_v53 = vld [vmem:[%s9621_s8 + $0x50] sm:$0xff] }
  0x7d   : > { %v764_v38 = vrot.slane %v750_v32, %v9646_v25  ;;  %v8764_v45 = vpack.c.bf16 %v494_v31, %v298_v30  ;;  %v8770_v49 = vpack.c.bf16 %v499_v40, %v303_v39  ;;  %v767_v50 = vcombine.high %v245_v41, %v245_v41  ;;  %v300_v51 = vld [vmem:[%s9621_s8 + $0x40] sm:$0xff]  ;;  %v498_v54 = vld [vmem:[%s9621_s8 + $0x670] sm:$0x3]  ;;  %v305_v56 = vld [vmem:[%s9621_s8 + $0x68] sm:$0xff] }
  0x7e   : > { %v748_v42 = vcombine.high %v740_v33, %v740_v33  ;;  %v749_v43 = vcombine.high %v747_v34, %v747_v34  ;;  %v765_v46 = vcombine.high %v757_v35, %v757_v35  ;;  %v496_v52 = vld [vmem:[%s9621_s8 + $0x660] sm:$0x3]  ;;  %v774_v55 = vrot.slane %v245_v41, %v9646_v25  ;;  %v501_v57 = vld [vmem:[%s9621_s8 + $0x688] sm:$0x3]  ;;  %v307_v59 = vld [vmem:[%s9621_s8 + $0x78] sm:$0xff] }
  0x7f   : > { %v766_v48 = vcombine.high %v764_v38, %v764_v38  ;;  %v781_v58 = vrot.slane %v767_v50, %v9646_v25  ;;  %v503_v60 = vld [vmem:[%s9621_s8 + $0x698] sm:$0x3]  ;;  %v246_v61 = vld [vmem:[%s9614_s10 + $0x18] sm:$0xff]  ;;  %v8768_v62 = vpack.c.bf16 %v496_v52, %v300_v51  ;;  %v8772_v63 = vpack.c.bf16 %v498_v54, %v302_v53  ;;  %v304_v5 = vld [vmem:[%s9621_s8 + $0x60] sm:$0xff] }
  0x80   : > { %1826 = vmatprep.mubr.f32.mxu0 %v748_v42  ;;  %1896 = vmatprep.mubr.f32.mxu1 %v749_v43  ;;  %v782_v0 = vcombine.high %v774_v55, %v774_v55  ;;  %v8774_v1 = vpack.c.bf16 %v501_v57, %v305_v56  ;;  %v8778_v3 = vpack.c.bf16 %v503_v60, %v307_v59  ;;  %v500_v6 = vld [vmem:[%s9621_s8 + $0x680] sm:$0x3]  ;;  %v306_v7 = vld [vmem:[%s9621_s8 + $0x70] sm:$0xff]  ;;  %v309_v10 = vld [vmem:[%s9621_s8 + $0x88] sm:$0xff] }
  0x81   : > { %1827 = vmatmul.mubr.f32.vlgmr.msra.gmra.mrb[0].mxu0 %v740_v33  ;;  %v783_v2 = vcombine.high %v781_v58, %v781_v58  ;;  %v784_v4 = vcombine.high %v246_v61, %v246_v61  ;;  %v502_v8 = vld [vmem:[%s9621_s8 + $0x690] sm:$0x3]  ;;  %v791_v9 = vrot.slane %v246_v61, %v9646_v25  ;;  %v505_v11 = vld [vmem:[%s9621_s8 + $0x6a8] sm:$0x3]  ;;  %v311_v13 = vld [vmem:[%s9621_s8 + $0x98] sm:$0xff]  ;;  %v8776_v16 = vpack.c.bf16 %v500_v6, %v304_v5 }
  0x82   : > { %1897 = vmatmul.mubr.f32.vlgmr.msra.gmra.mrb[0].mxu1 %v747_v34  ;;  %8761 = vmatpush1.bf16.xpose.msra.mxu0 %v8760_v44  ;;  %v507_v14 = vld [vmem:[%s9621_s8 + $0x6b8] sm:$0x3]  ;;  %v8780_v17 = vpack.c.bf16 %v502_v8, %v306_v7  ;;  %v8782_v19 = vpack.c.bf16 %v505_v11, %v309_v10  ;;  %v308_v23 = vld [vmem:[%s9621_s8 + $0x80] sm:$0xff]  ;;  %v310_v26 = vld [vmem:[%s9621_s8 + $0x90] sm:$0xff] }
  0x83   : > { %8765 = vmatpush1.bf16.xpose.msra.mxu1 %v8764_v45  ;;  %1966 = vmatprep.mubr.f32.mxu0 %v765_v46  ;;  %v798_v12 = vrot.slane %v784_v4, %v9646_v25  ;;  %v247_v15 = vld [vmem:[%s9614_s10 + $0x20] sm:$0xff]  ;;  %v799_v18 = vcombine.high %v791_v9, %v791_v9  ;;  %v8786_v21 = vpack.c.bf16 %v507_v14, %v311_v13  ;;  %v504_v24 = vld [vmem:[%s9621_s8 + $0x6a0] sm:$0x3]  ;;  %v313_v29 = vld [vmem:[%s9621_s8 + $0xa8] sm:$0xff] }
  0x84   : > { %8767 = vmatprep.subr.bf16.mxu0 %v8766_v47  ;;  %2036 = vmatprep.mubr.f32.mxu1 %v766_v48  ;;  %v801_v22 = vcombine.high %v247_v15, %v247_v15  ;;  %v506_v27 = vld [vmem:[%s9621_s8 + $0x6b0] sm:$0x3]  ;;  %v808_v28 = vrot.slane %v247_v15, %v9646_v25  ;;  %v509_v30 = vld [vmem:[%s9621_s8 + $0x6c8] sm:$0x3]  ;;  %v315_v32 = vld [vmem:[%s9621_s8 + $0xb8] sm:$0xff] }
  0x85   : > { %8771 = vmatprep.subr.bf16.mxu1 %v8770_v49  ;;  %v800_v20 = vcombine.high %v798_v12, %v798_v12  ;;  %v511_v33 = vld [vmem:[%s9621_s8 + $0x6d8] sm:$0x3]  ;;  %v8788_v36 = vpack.c.bf16 %v506_v27, %v310_v26  ;;  %v312_v42 = vld [vmem:[%s9621_s8 + $0xa0] sm:$0xff]  ;;  %v314_v44 = vld [vmem:[%s9621_s8 + $0xb0] sm:$0xff] }
  0x86   : > { %v815_v31 = vrot.slane %v801_v22, %v9646_v25  ;;  %v248_v34 = vld [vmem:[%s9614_s10 + $0x28] sm:$0xff]  ;;  %v816_v37 = vcombine.high %v808_v28, %v808_v28  ;;  %v8794_v40 = vpack.c.bf16 %v511_v33, %v315_v32  ;;  %v510_v45 = vld [vmem:[%s9621_s8 + $0x6d0] sm:$0x3]  ;;  %v317_v47 = vld [vmem:[%s9621_s8 + $0xc8] sm:$0xff] }
  0x87   : > { %v818_v41 = vcombine.high %v248_v34, %v248_v34  ;;  %v508_v43 = vld [vmem:[%s9621_s8 + $0x6c0] sm:$0x3]  ;;  %v825_v46 = vrot.slane %v248_v34, %v9646_v25  ;;  %v513_v48 = vld [vmem:[%s9621_s8 + $0x6e8] sm:$0x3]  ;;  %v319_v50 = vld [vmem:[%s9621_s8 + $0xd8] sm:$0xff]  ;;  %v8796_v54 = vpack.c.bf16 %v510_v45, %v314_v44 }
  0x88   : > { %v817_v39 = vcombine.high %v815_v31, %v815_v31  ;;  %v515_v51 = vld [vmem:[%s9621_s8 + $0x6f8] sm:$0x3]  ;;  %v249_v52 = vld [vmem:[%s9614_s10 + $0x30] sm:$0xff]  ;;  %v8792_v53 = vpack.c.bf16 %v508_v43, %v312_v42  ;;  %v8798_v56 = vpack.c.bf16 %v513_v48, %v317_v47  ;;  %v250_v6 = vld [vmem:[%s9614_s10 + $0x38] sm:$0xff] }
  0x89   : > { %1967 = vmatmul.mubr.f32.vlgmr.msra.gmra.mrb[2].mxu0 %v757_v35  ;;  %v8784_v35 = vpack.c.bf16 %v504_v24, %v308_v23  ;;  %v832_v49 = vrot.slane %v818_v41, %v9646_v25  ;;  %v835_v59 = vcombine.high %v249_v52, %v249_v52  ;;  %v316_v60 = vld [vmem:[%s9621_s8 + $0xc0] sm:$0xff]  ;;  %v323_v4 = vld [vmem:[%s9621_s8 + $0xf8] sm:$0xff]  ;;  %v852_v13 = vcombine.high %v250_v6, %v250_v6 }
  0x8a   : > { %2037 = vmatmul.mubr.f32.vlgmr.msra.gmra.mrb[2].mxu1 %v764_v38  ;;  %8769 = vmatpush1.bf16.xpose.msra.mxu0 %v8768_v62  ;;  %v8790_v38 = vpack.c.bf16 %v509_v30, %v313_v29  ;;  %v512_v61 = vld [vmem:[%s9621_s8 + $0x6e0] sm:$0x3]  ;;  %v318_v62 = vld [vmem:[%s9621_s8 + $0xd0] sm:$0xff]  ;;  %v519_v5 = vld [vmem:[%s9621_s8 + $0x718] sm:$0x3] }
  0x8b   : > { %8773 = vmatpush1.bf16.xpose.msra.mxu1 %v8772_v63  ;;  %2106 = vmatprep.mubr.f32.mxu0 %v782_v0  ;;  %v834_v57 = vcombine.high %v832_v49, %v832_v49  ;;  %v514_v63 = vld [vmem:[%s9621_s8 + $0x6f0] sm:$0x3]  ;;  %v842_v0 = vrot.slane %v249_v52, %v9646_v25  ;;  %v8800_v7 = vpack.c.bf16 %v512_v61, %v316_v60  ;;  %v320_v14 = vld [vmem:[%s9621_s8 + $0xe0] sm:$0xff]  ;;  %v327_v22 = vld [vmem:[%s9621_s8 + $0x118] sm:$0xff] }
  0x8c   : > { %8775 = vmatprep.subr.bf16.mxu0 %v8774_v1  ;;  %2176 = vmatprep.mubr.f32.mxu1 %v783_v2  ;;  %v321_v1 = vld [vmem:[%s9621_s8 + $0xe8] sm:$0xff]  ;;  %v8804_v8 = vpack.c.bf16 %v514_v63, %v318_v62  ;;  %v516_v15 = vld [vmem:[%s9621_s8 + $0x700] sm:$0x3]  ;;  %v523_v23 = vld [vmem:[%s9621_s8 + $0x738] sm:$0x3] }
  0x8d   : > { %8779 = vmatprep.subr.bf16.mxu1 %v8778_v3  ;;  %v517_v2 = vld [vmem:[%s9621_s8 + $0x708] sm:$0x3]  ;;  %v849_v3 = vrot.slane %v835_v59, %v9646_v25  ;;  %v251_v24 = vld [vmem:[%s9614_s10 + $0x40] sm:$0xff]  ;;  %v8808_v26 = vpack.c.bf16 %v516_v15, %v320_v14  ;;  %v324_v33 = vld [vmem:[%s9621_s8 + $0x100] sm:$0xff] }
  0x8e   : > { %v8806_v10 = vpack.c.bf16 %v517_v2, %v321_v1  ;;  %v869_v32 = vcombine.high %v251_v24, %v251_v24  ;;  %v520_v34 = vld [vmem:[%s9621_s8 + $0x720] sm:$0x3]  ;;  %v331_v41 = vld [vmem:[%s9621_s8 + $0x138] sm:$0xff]  ;;  %v254_v15 = vld [vmem:[%s9614_s10 + $0x58] sm:$0xff] }
  0x8f   : > { %v851_v11 = vcombine.high %v849_v3, %v849_v3  ;;  %v527_v42 = vld [vmem:[%s9621_s8 + $0x758] sm:$0x3]  ;;  %v8816_v44 = vpack.c.bf16 %v520_v34, %v324_v33  ;;  %v524_v52 = vld [vmem:[%s9621_s8 + $0x740] sm:$0x3] }
  0x90   : > { %v252_v43 = vld [vmem:[%s9614_s10 + $0x48] sm:$0xff]  ;;  %v253_v61 = vld [vmem:[%s9614_s10 + $0x50] sm:$0xff]  ;;  %v255_v34 = vld [vmem:[%s9614_s10 + $0x60] sm:$0xff] }
  0x91   : > { %2107 = vmatmul.mubr.f32.vlgmr.msra.gmra.mrb[4].mxu0 %v774_v55  ;;  %v833_v55 = vcombine.high %v825_v46, %v825_v46  ;;  %v335_v59 = vld [vmem:[%s9621_s8 + $0x158] sm:$0xff] }
  0x92   : > { %2177 = vmatmul.mubr.f32.vlgmr.msra.gmra.mrb[4].mxu1 %v781_v58  ;;  %8777 = vmatpush1.bf16.xpose.msra.mxu0 %v8776_v16  ;;  %v8802_v58 = vpack.c.bf16 %v515_v51, %v319_v50  ;;  %v322_v16 = vld [vmem:[%s9621_s8 + $0xf0] sm:$0xff]  ;;  %v886_v50 = vcombine.high %v252_v43, %v252_v43  ;;  %v328_v51 = vld [vmem:[%s9621_s8 + $0x120] sm:$0xff]  ;;  %v531_v60 = vld [vmem:[%s9621_s8 + $0x778] sm:$0x3] }
  0x93   : > { %8781 = vmatpush1.bf16.xpose.msra.mxu1 %v8780_v17  ;;  %2246 = vmatprep.mubr.f32.mxu0 %v799_v18  ;;  %v518_v17 = vld [vmem:[%s9621_s8 + $0x710] sm:$0x3]  ;;  %v859_v18 = vrot.slane %v250_v6, %v9646_v25  ;;  %v8824_v62 = vpack.c.bf16 %v524_v52, %v328_v51  ;;  %v528_v6 = vld [vmem:[%s9621_s8 + $0x760] sm:$0x3]  ;;  %v535_v14 = vld [vmem:[%s9621_s8 + $0x798] sm:$0x3] }
  0x94   : > { %8783 = vmatprep.subr.bf16.mxu0 %v8782_v19  ;;  %2316 = vmatprep.mubr.f32.mxu1 %v800_v20  ;;  %v325_v19 = vld [vmem:[%s9621_s8 + $0x108] sm:$0xff]  ;;  %v8812_v27 = vpack.c.bf16 %v518_v17, %v322_v16  ;;  %v539_v33 = vld [vmem:[%s9621_s8 + $0x7b8] sm:$0x3] }
  0x95   : > { %8787 = vmatprep.subr.bf16.mxu1 %v8786_v21  ;;  %v521_v20 = vld [vmem:[%s9621_s8 + $0x728] sm:$0x3]  ;;  %v866_v21 = vrot.slane %v852_v13, %v9646_v25  ;;  %v339_v13 = vld [vmem:[%s9621_s8 + $0x178] sm:$0xff] }
  0x96   : > { %v8814_v29 = vpack.c.bf16 %v521_v20, %v325_v19  ;;  %v543_v51 = vld [vmem:[%s9621_s8 + $0x7d8] sm:$0x3] }
  0x97   : > { %v868_v30 = vcombine.high %v866_v21, %v866_v21  ;;  %v256_v52 = vld [vmem:[%s9614_s10 + $0x68] sm:$0xff] }
  0x99   : > { %2247 = vmatmul.mubr.f32.vlgmr.msra.gmra.mrb[6].mxu0 %v791_v9  ;;  %v850_v9 = vcombine.high %v842_v0, %v842_v0 }
  0x9a   : > { %2317 = vmatmul.mubr.f32.vlgmr.msra.gmra.mrb[6].mxu1 %v798_v12  ;;  %8785 = vmatpush1.bf16.xpose.msra.mxu0 %v8784_v35  ;;  %v8810_v12 = vpack.c.bf16 %v519_v5, %v323_v4  ;;  %v326_v35 = vld [vmem:[%s9621_s8 + $0x110] sm:$0xff]  ;;  %v903_v4 = vcombine.high %v253_v61, %v253_v61  ;;  %v332_v5 = vld [vmem:[%s9621_s8 + $0x140] sm:$0xff] }
  0x9b   : > { %8789 = vmatpush1.bf16.xpose.msra.mxu1 %v8788_v36  ;;  %2386 = vmatprep.mubr.f32.mxu0 %v816_v37  ;;  %v522_v36 = vld [vmem:[%s9621_s8 + $0x730] sm:$0x3]  ;;  %v876_v37 = vrot.slane %v251_v24, %v9646_v25  ;;  %v8832_v16 = vpack.c.bf16 %v528_v6, %v332_v5  ;;  %v532_v24 = vld [vmem:[%s9621_s8 + $0x780] sm:$0x3]  ;;  %v547_v5 = vld [vmem:[%s9621_s8 + $0x7f8] sm:$0x3] }
  0x9c   : > { %8791 = vmatprep.subr.bf16.mxu0 %v8790_v38  ;;  %2456 = vmatprep.mubr.f32.mxu1 %v817_v39  ;;  %v329_v38 = vld [vmem:[%s9621_s8 + $0x128] sm:$0xff]  ;;  %v8820_v45 = vpack.c.bf16 %v522_v36, %v326_v35 }
  0x9d   : > { %8795 = vmatprep.subr.bf16.mxu1 %v8794_v40  ;;  %v525_v39 = vld [vmem:[%s9621_s8 + $0x748] sm:$0x3]  ;;  %v883_v40 = vrot.slane %v869_v32, %v9646_v25  ;;  %v343_v32 = vld [vmem:[%s9621_s8 + $0x198] sm:$0xff] }
  0x9e   : > { %v8822_v47 = vpack.c.bf16 %v525_v39, %v329_v38  ;;  %v257_v6 = vld [vmem:[%s9614_s10 + $0x70] sm:$0xff] }
  0x9f   : > { %v885_v48 = vcombine.high %v883_v40, %v883_v40 }
  0xa1   : > { %2387 = vmatmul.mubr.f32.vlgmr.msra.gmra.mrb[8].mxu0 %v808_v28  ;;  %v867_v28 = vcombine.high %v859_v18, %v859_v18 }
  0xa2   : > { %2457 = vmatmul.mubr.f32.vlgmr.msra.gmra.mrb[8].mxu1 %v815_v31  ;;  %8793 = vmatpush1.bf16.xpose.msra.mxu0 %v8792_v53  ;;  %v8818_v31 = vpack.c.bf16 %v523_v23, %v327_v22  ;;  %v330_v53 = vld [vmem:[%s9621_s8 + $0x130] sm:$0xff]  ;;  %v920_v22 = vcombine.high %v254_v15, %v254_v15  ;;  %v336_v23 = vld [vmem:[%s9621_s8 + $0x160] sm:$0xff] }
  0xa3   : > { %8797 = vmatpush1.bf16.xpose.msra.mxu1 %v8796_v54  ;;  %2526 = vmatprep.mubr.f32.mxu0 %v833_v55  ;;  %v526_v54 = vld [vmem:[%s9621_s8 + $0x750] sm:$0x3]  ;;  %v893_v55 = vrot.slane %v252_v43, %v9646_v25  ;;  %v8840_v35 = vpack.c.bf16 %v532_v24, %v336_v23  ;;  %v536_v43 = vld [vmem:[%s9621_s8 + $0x7a0] sm:$0x3]  ;;  %v551_v23 = vld [vmem:[%s9621_s8 + $0x818] sm:$0x3] }
  0xa4   : > { %8799 = vmatprep.subr.bf16.mxu0 %v8798_v56  ;;  %2596 = vmatprep.mubr.f32.mxu1 %v834_v57  ;;  %v333_v56 = vld [vmem:[%s9621_s8 + $0x148] sm:$0xff]  ;;  %v8828_v63 = vpack.c.bf16 %v526_v54, %v330_v53 }
  0xa5   : > { %8803 = vmatprep.subr.bf16.mxu1 %v8802_v58  ;;  %v529_v57 = vld [vmem:[%s9621_s8 + $0x768] sm:$0x3]  ;;  %v900_v58 = vrot.slane %v886_v50, %v9646_v25  ;;  %v347_v50 = vld [vmem:[%s9621_s8 + $0x1b8] sm:$0xff] }
  0xa6   : > { %v8830_v1 = vpack.c.bf16 %v529_v57, %v333_v56  ;;  %v258_v24 = vld [vmem:[%s9614_s10 + $0x78] sm:$0xff] }
  0xa7   : > { %v902_v2 = vcombine.high %v900_v58, %v900_v58 }
  0xa9   : > { %2527 = vmatmul.mubr.f32.vlgmr.msra.gmra.mrb[10].mxu0 %v825_v46  ;;  %v884_v46 = vcombine.high %v876_v37, %v876_v37 }
  0xaa   : > { %2597 = vmatmul.mubr.f32.vlgmr.msra.gmra.mrb[10].mxu1 %v832_v49  ;;  %8801 = vmatpush1.bf16.xpose.msra.mxu0 %v8800_v7  ;;  %v8826_v49 = vpack.c.bf16 %v527_v42, %v331_v41  ;;  %v334_v7 = vld [vmem:[%s9621_s8 + $0x150] sm:$0xff]  ;;  %v937_v41 = vcombine.high %v255_v34, %v255_v34  ;;  %v340_v42 = vld [vmem:[%s9621_s8 + $0x180] sm:$0xff] }
  0xab   : > { %8805 = vmatpush1.bf16.xpose.msra.mxu1 %v8804_v8  ;;  %2666 = vmatprep.mubr.f32.mxu0 %v850_v9  ;;  %v530_v8 = vld [vmem:[%s9621_s8 + $0x770] sm:$0x3]  ;;  %v910_v9 = vrot.slane %v253_v61, %v9646_v25  ;;  %v8848_v53 = vpack.c.bf16 %v536_v43, %v340_v42  ;;  %v540_v61 = vld [vmem:[%s9621_s8 + $0x7c0] sm:$0x3]  ;;  %v555_v42 = vld [vmem:[%s9621_s8 + $0x838] sm:$0x3] }
  0xac   : > { %8807 = vmatprep.subr.bf16.mxu0 %v8806_v10  ;;  %2736 = vmatprep.mubr.f32.mxu1 %v851_v11  ;;  %v337_v10 = vld [vmem:[%s9621_s8 + $0x168] sm:$0xff]  ;;  %v8836_v17 = vpack.c.bf16 %v530_v8, %v334_v7  ;;  %v259_v43 = vld [vmem:[%s9614_s10 + $0x80] sm:$0xff] }
  0xad   : > { %8811 = vmatprep.subr.bf16.mxu1 %v8810_v12  ;;  %v533_v11 = vld [vmem:[%s9621_s8 + $0x788] sm:$0x3]  ;;  %v917_v12 = vrot.slane %v903_v4, %v9646_v25  ;;  %v351_v4 = vld [vmem:[%s9621_s8 + $0x1d8] sm:$0xff] }
  0xae   : > { %v8838_v19 = vpack.c.bf16 %v533_v11, %v337_v10 }
  0xaf   : > { %v919_v20 = vcombine.high %v917_v12, %v917_v12 }
  0xb1   : > { %2667 = vmatmul.mubr.f32.vlgmr.msra.gmra.mrb[12].mxu0 %v842_v0  ;;  %v901_v0 = vcombine.high %v893_v55, %v893_v55 }
  0xb2   : > { %2737 = vmatmul.mubr.f32.vlgmr.msra.gmra.mrb[12].mxu1 %v849_v3  ;;  %8809 = vmatpush1.bf16.xpose.msra.mxu0 %v8808_v26  ;;  %v8834_v3 = vpack.c.bf16 %v531_v60, %v335_v59  ;;  %v338_v26 = vld [vmem:[%s9621_s8 + $0x170] sm:$0xff]  ;;  %v954_v59 = vcombine.high %v256_v52, %v256_v52  ;;  %v344_v60 = vld [vmem:[%s9621_s8 + $0x1a0] sm:$0xff] }
  0xb3   : > { %8813 = vmatpush1.bf16.xpose.msra.mxu1 %v8812_v27  ;;  %2806 = vmatprep.mubr.f32.mxu0 %v867_v28  ;;  %v534_v27 = vld [vmem:[%s9621_s8 + $0x790] sm:$0x3]  ;;  %v927_v28 = vrot.slane %v254_v15, %v9646_v25  ;;  %v8856_v7 = vpack.c.bf16 %v540_v61, %v344_v60  ;;  %v544_v15 = vld [vmem:[%s9621_s8 + $0x7e0] sm:$0x3]  ;;  %v559_v60 = vld [vmem:[%s9621_s8 + $0x858] sm:$0x3] }
  0xb4   : > { %8815 = vmatprep.subr.bf16.mxu0 %v8814_v29  ;;  %2876 = vmatprep.mubr.f32.mxu1 %v868_v30  ;;  %v341_v29 = vld [vmem:[%s9621_s8 + $0x188] sm:$0xff]  ;;  %v8844_v36 = vpack.c.bf16 %v534_v27, %v338_v26  ;;  %v260_v61 = vld [vmem:[%s9614_s10 + $0x88] sm:$0xff] }
  0xb5   : > { %8819 = vmatprep.subr.bf16.mxu1 %v8818_v31  ;;  %v537_v30 = vld [vmem:[%s9621_s8 + $0x7a8] sm:$0x3]  ;;  %v934_v31 = vrot.slane %v920_v22, %v9646_v25  ;;  %v355_v22 = vld [vmem:[%s9621_s8 + $0x1f8] sm:$0xff] }
  0xb6   : > { %v8846_v38 = vpack.c.bf16 %v537_v30, %v341_v29 }
  0xb7   : > { %v936_v39 = vcombine.high %v934_v31, %v934_v31 }
  0xb9   : > { %2807 = vmatmul.mubr.f32.vlgmr.msra.gmra.mrb[14].mxu0 %v859_v18  ;;  %v918_v18 = vcombine.high %v910_v9, %v910_v9 }
  0xba   : > { %2877 = vmatmul.mubr.f32.vlgmr.msra.gmra.mrb[14].mxu1 %v866_v21  ;;  %8817 = vmatpush1.bf16.xpose.msra.mxu0 %v8816_v44  ;;  %v8842_v21 = vpack.c.bf16 %v535_v14, %v339_v13  ;;  %v342_v44 = vld [vmem:[%s9621_s8 + $0x190] sm:$0xff]  ;;  %v971_v13 = vcombine.high %v257_v6, %v257_v6  ;;  %v348_v14 = vld [vmem:[%s9621_s8 + $0x1c0] sm:$0xff] }
  0xbb   : > { %8821 = vmatpush1.bf16.xpose.msra.mxu1 %v8820_v45  ;;  %2946 = vmatprep.mubr.f32.mxu0 %v884_v46  ;;  %v538_v45 = vld [vmem:[%s9621_s8 + $0x7b0] sm:$0x3]  ;;  %v944_v46 = vrot.slane %v255_v34, %v9646_v25  ;;  %v8864_v26 = vpack.c.bf16 %v544_v15, %v348_v14  ;;  %v548_v34 = vld [vmem:[%s9621_s8 + $0x800] sm:$0x3]  ;;  %v563_v14 = vld [vmem:[%s9621_s8 + $0x878] sm:$0x3] }
  0xbc   : > { %8823 = vmatprep.subr.bf16.mxu0 %v8822_v47  ;;  %3016 = vmatprep.mubr.f32.mxu1 %v885_v48  ;;  %v345_v47 = vld [vmem:[%s9621_s8 + $0x1a8] sm:$0xff]  ;;  %v8852_v54 = vpack.c.bf16 %v538_v45, %v342_v44 }
  0xbd   : > { %8827 = vmatprep.subr.bf16.mxu1 %v8826_v49  ;;  %v541_v48 = vld [vmem:[%s9621_s8 + $0x7c8] sm:$0x3]  ;;  %v951_v49 = vrot.slane %v937_v41, %v9646_v25  ;;  %v359_v41 = vld [vmem:[%s9621_s8 + $0x218] sm:$0xff] }
  0xbe   : > { %v8854_v56 = vpack.c.bf16 %v541_v48, %v345_v47  ;;  %v261_v15 = vld [vmem:[%s9614_s10 + $0x90] sm:$0xff] }
  0xbf   : > { %v953_v57 = vcombine.high %v951_v49, %v951_v49 }
  0xc1   : > { %2947 = vmatmul.mubr.f32.vlgmr.msra.gmra.mrb[16].mxu0 %v876_v37  ;;  %v935_v37 = vcombine.high %v927_v28, %v927_v28 }
  0xc2   : > { %3017 = vmatmul.mubr.f32.vlgmr.msra.gmra.mrb[16].mxu1 %v883_v40  ;;  %8825 = vmatpush1.bf16.xpose.msra.mxu0 %v8824_v62  ;;  %v8850_v40 = vpack.c.bf16 %v539_v33, %v343_v32  ;;  %v346_v62 = vld [vmem:[%s9621_s8 + $0x1b0] sm:$0xff]  ;;  %v988_v32 = vcombine.high %v258_v24, %v258_v24  ;;  %v352_v33 = vld [vmem:[%s9621_s8 + $0x1e0] sm:$0xff] }
  0xc3   : > { %8829 = vmatpush1.bf16.xpose.msra.mxu1 %v8828_v63  ;;  %3086 = vmatprep.mubr.f32.mxu0 %v901_v0  ;;  %v542_v63 = vld [vmem:[%s9621_s8 + $0x7d0] sm:$0x3]  ;;  %v961_v0 = vrot.slane %v256_v52, %v9646_v25  ;;  %v8872_v44 = vpack.c.bf16 %v548_v34, %v352_v33  ;;  %v552_v52 = vld [vmem:[%s9621_s8 + $0x820] sm:$0x3]  ;;  %v567_v33 = vld [vmem:[%s9621_s8 + $0x898] sm:$0x3] }
  0xc4   : > { %8831 = vmatprep.subr.bf16.mxu0 %v8830_v1  ;;  %3156 = vmatprep.mubr.f32.mxu1 %v902_v2  ;;  %v349_v1 = vld [vmem:[%s9621_s8 + $0x1c8] sm:$0xff]  ;;  %v8860_v8 = vpack.c.bf16 %v542_v63, %v346_v62 }
  0xc5   : > { %8835 = vmatprep.subr.bf16.mxu1 %v8834_v3  ;;  %v545_v2 = vld [vmem:[%s9621_s8 + $0x7e8] sm:$0x3]  ;;  %v968_v3 = vrot.slane %v954_v59, %v9646_v25  ;;  %v363_v59 = vld [vmem:[%s9621_s8 + $0x238] sm:$0xff] }
  0xc6   : > { %v8862_v10 = vpack.c.bf16 %v545_v2, %v349_v1  ;;  %v262_v34 = vld [vmem:[%s9614_s10 + $0x98] sm:$0xff] }
  0xc7   : > { %v970_v11 = vcombine.high %v968_v3, %v968_v3 }
  0xc9   : > { %3087 = vmatmul.mubr.f32.vlgmr.msra.gmra.mrb[18].mxu0 %v893_v55  ;;  %v952_v55 = vcombine.high %v944_v46, %v944_v46 }
  0xca   : > { %3157 = vmatmul.mubr.f32.vlgmr.msra.gmra.mrb[18].mxu1 %v900_v58  ;;  %8833 = vmatpush1.bf16.xpose.msra.mxu0 %v8832_v16  ;;  %v8858_v58 = vpack.c.bf16 %v543_v51, %v347_v50  ;;  %v350_v16 = vld [vmem:[%s9621_s8 + $0x1d0] sm:$0xff]  ;;  %v1005_v50 = vcombine.high %v259_v43, %v259_v43  ;;  %v356_v51 = vld [vmem:[%s9621_s8 + $0x200] sm:$0xff] }
  0xcb   : > { %8837 = vmatpush1.bf16.xpose.msra.mxu1 %v8836_v17  ;;  %3226 = vmatprep.mubr.f32.mxu0 %v918_v18  ;;  %v546_v17 = vld [vmem:[%s9621_s8 + $0x7f0] sm:$0x3]  ;;  %v978_v18 = vrot.slane %v257_v6, %v9646_v25  ;;  %v8880_v62 = vpack.c.bf16 %v552_v52, %v356_v51  ;;  %v556_v6 = vld [vmem:[%s9621_s8 + $0x840] sm:$0x3]  ;;  %v571_v51 = vld [vmem:[%s9621_s8 + $0x8b8] sm:$0x3] }
  0xcc   : > { %8839 = vmatprep.subr.bf16.mxu0 %v8838_v19  ;;  %3296 = vmatprep.mubr.f32.mxu1 %v919_v20  ;;  %v353_v19 = vld [vmem:[%s9621_s8 + $0x1e8] sm:$0xff]  ;;  %v8868_v27 = vpack.c.bf16 %v546_v17, %v350_v16  ;;  %v263_v52 = vld [vmem:[%s9614_s10 + $0xa0] sm:$0xff] }
  0xcd   : > { %8843 = vmatprep.subr.bf16.mxu1 %v8842_v21  ;;  %v549_v20 = vld [vmem:[%s9621_s8 + $0x808] sm:$0x3]  ;;  %v985_v21 = vrot.slane %v971_v13, %v9646_v25  ;;  %v367_v13 = vld [vmem:[%s9621_s8 + $0x258] sm:$0xff] }
  0xce   : > { %v8870_v29 = vpack.c.bf16 %v549_v20, %v353_v19 }
  0xcf   : > { %v987_v30 = vcombine.high %v985_v21, %v985_v21 }
  0xd1   : > { %3227 = vmatmul.mubr.f32.vlgmr.msra.gmra.mrb[20].mxu0 %v910_v9  ;;  %v969_v9 = vcombine.high %v961_v0, %v961_v0 }
  0xd2   : > { %3297 = vmatmul.mubr.f32.vlgmr.msra.gmra.mrb[20].mxu1 %v917_v12  ;;  %8841 = vmatpush1.bf16.xpose.msra.mxu0 %v8840_v35  ;;  %v8866_v12 = vpack.c.bf16 %v547_v5, %v351_v4  ;;  %v354_v35 = vld [vmem:[%s9621_s8 + $0x1f0] sm:$0xff]  ;;  %v1022_v4 = vcombine.high %v260_v61, %v260_v61  ;;  %v360_v5 = vld [vmem:[%s9621_s8 + $0x220] sm:$0xff] }
  0xd3   : > { %8845 = vmatpush1.bf16.xpose.msra.mxu1 %v8844_v36  ;;  %3366 = vmatprep.mubr.f32.mxu0 %v935_v37  ;;  %v550_v36 = vld [vmem:[%s9621_s8 + $0x810] sm:$0x3]  ;;  %v995_v37 = vrot.slane %v258_v24, %v9646_v25  ;;  %v8888_v16 = vpack.c.bf16 %v556_v6, %v360_v5  ;;  %v560_v24 = vld [vmem:[%s9621_s8 + $0x860] sm:$0x3]  ;;  %v575_v5 = vld [vmem:[%s9621_s8 + $0x8d8] sm:$0x3] }
  0xd4   : > { %8847 = vmatprep.subr.bf16.mxu0 %v8846_v38  ;;  %3436 = vmatprep.mubr.f32.mxu1 %v936_v39  ;;  %v357_v38 = vld [vmem:[%s9621_s8 + $0x208] sm:$0xff]  ;;  %v8876_v45 = vpack.c.bf16 %v550_v36, %v354_v35  ;;  %v264_v6 = vld [vmem:[%s9614_s10 + $0xa8] sm:$0xff] }
  0xd5   : > { %8851 = vmatprep.subr.bf16.mxu1 %v8850_v40  ;;  %v553_v39 = vld [vmem:[%s9621_s8 + $0x828] sm:$0x3]  ;;  %v1002_v40 = vrot.slane %v988_v32, %v9646_v25  ;;  %v371_v32 = vld [vmem:[%s9621_s8 + $0x278] sm:$0xff] }
  0xd6   : > { %v8878_v47 = vpack.c.bf16 %v553_v39, %v357_v38 }
  0xd7   : > { %v1004_v48 = vcombine.high %v1002_v40, %v1002_v40 }
  0xd9   : > { %3367 = vmatmul.mubr.f32.vlgmr.msra.gmra.mrb[22].mxu0 %v927_v28  ;;  %v986_v28 = vcombine.high %v978_v18, %v978_v18 }
  0xda   : > { %3437 = vmatmul.mubr.f32.vlgmr.msra.gmra.mrb[22].mxu1 %v934_v31  ;;  %8849 = vmatpush1.bf16.xpose.msra.mxu0 %v8848_v53  ;;  %v8874_v31 = vpack.c.bf16 %v551_v23, %v355_v22  ;;  %v358_v53 = vld [vmem:[%s9621_s8 + $0x210] sm:$0xff]  ;;  %v1039_v22 = vcombine.high %v261_v15, %v261_v15  ;;  %v364_v23 = vld [vmem:[%s9621_s8 + $0x240] sm:$0xff] }
  0xdb   : > { %8853 = vmatpush1.bf16.xpose.msra.mxu1 %v8852_v54  ;;  %3506 = vmatprep.mubr.f32.mxu0 %v952_v55  ;;  %v554_v54 = vld [vmem:[%s9621_s8 + $0x830] sm:$0x3]  ;;  %v1012_v55 = vrot.slane %v259_v43, %v9646_v25  ;;  %v8896_v35 = vpack.c.bf16 %v560_v24, %v364_v23  ;;  %v564_v43 = vld [vmem:[%s9621_s8 + $0x880] sm:$0x3]  ;;  %v579_v23 = vld [vmem:[%s9621_s8 + $0x8f8] sm:$0x3] }
  0xdc   : > { %8855 = vmatprep.subr.bf16.mxu0 %v8854_v56  ;;  %3576 = vmatprep.mubr.f32.mxu1 %v953_v57  ;;  %v361_v56 = vld [vmem:[%s9621_s8 + $0x228] sm:$0xff]  ;;  %v8884_v63 = vpack.c.bf16 %v554_v54, %v358_v53 }
  0xdd   : > { %8859 = vmatprep.subr.bf16.mxu1 %v8858_v58  ;;  %v557_v57 = vld [vmem:[%s9621_s8 + $0x848] sm:$0x3]  ;;  %v1019_v58 = vrot.slane %v1005_v50, %v9646_v25  ;;  %v375_v50 = vld [vmem:[%s9621_s8 + $0x298] sm:$0xff] }
  0xde   : > { %v8886_v1 = vpack.c.bf16 %v557_v57, %v361_v56  ;;  %v265_v24 = vld [vmem:[%s9614_s10 + $0xb0] sm:$0xff] }
  0xdf   : > { %v1021_v2 = vcombine.high %v1019_v58, %v1019_v58 }
  0xe1   : > { %3507 = vmatmul.mubr.f32.vlgmr.msra.gmra.mrb[24].mxu0 %v944_v46  ;;  %v1003_v46 = vcombine.high %v995_v37, %v995_v37 }
  0xe2   : > { %3577 = vmatmul.mubr.f32.vlgmr.msra.gmra.mrb[24].mxu1 %v951_v49  ;;  %8857 = vmatpush1.bf16.xpose.msra.mxu0 %v8856_v7  ;;  %v8882_v49 = vpack.c.bf16 %v555_v42, %v359_v41  ;;  %v362_v7 = vld [vmem:[%s9621_s8 + $0x230] sm:$0xff]  ;;  %v1056_v41 = vcombine.high %v262_v34, %v262_v34  ;;  %v368_v42 = vld [vmem:[%s9621_s8 + $0x260] sm:$0xff] }
  0xe3   : > { %8861 = vmatpush1.bf16.xpose.msra.mxu1 %v8860_v8  ;;  %3646 = vmatprep.mubr.f32.mxu0 %v969_v9  ;;  %v558_v8 = vld [vmem:[%s9621_s8 + $0x850] sm:$0x3]  ;;  %v1029_v9 = vrot.slane %v260_v61, %v9646_v25  ;;  %v8904_v53 = vpack.c.bf16 %v564_v43, %v368_v42  ;;  %v568_v61 = vld [vmem:[%s9621_s8 + $0x8a0] sm:$0x3]  ;;  %v583_v42 = vld [vmem:[%s9621_s8 + $0x918] sm:$0x3] }
  0xe4   : > { %8863 = vmatprep.subr.bf16.mxu0 %v8862_v10  ;;  %3716 = vmatprep.mubr.f32.mxu1 %v970_v11  ;;  %v365_v10 = vld [vmem:[%s9621_s8 + $0x248] sm:$0xff]  ;;  %v8892_v17 = vpack.c.bf16 %v558_v8, %v362_v7 }
  0xe5   : > { %8867 = vmatprep.subr.bf16.mxu1 %v8866_v12  ;;  %v561_v11 = vld [vmem:[%s9621_s8 + $0x868] sm:$0x3]  ;;  %v1036_v12 = vrot.slane %v1022_v4, %v9646_v25  ;;  %v379_v4 = vld [vmem:[%s9621_s8 + $0x2b8] sm:$0xff] }
  0xe6   : > { %v8894_v19 = vpack.c.bf16 %v561_v11, %v365_v10  ;;  %v266_v43 = vld [vmem:[%s9614_s10 + $0xb8] sm:$0xff] }
  0xe7   : > { %v1038_v20 = vcombine.high %v1036_v12, %v1036_v12 }
  0xe9   : > { %3647 = vmatmul.mubr.f32.vlgmr.msra.gmra.mrb[26].mxu0 %v961_v0  ;;  %v1020_v0 = vcombine.high %v1012_v55, %v1012_v55 }
  0xea   : > { %3717 = vmatmul.mubr.f32.vlgmr.msra.gmra.mrb[26].mxu1 %v968_v3  ;;  %8865 = vmatpush1.bf16.xpose.msra.mxu0 %v8864_v26  ;;  %v8890_v3 = vpack.c.bf16 %v559_v60, %v363_v59  ;;  %v366_v26 = vld [vmem:[%s9621_s8 + $0x250] sm:$0xff]  ;;  %v1073_v59 = vcombine.high %v263_v52, %v263_v52  ;;  %v372_v60 = vld [vmem:[%s9621_s8 + $0x280] sm:$0xff] }
  0xeb   : > { %8869 = vmatpush1.bf16.xpose.msra.mxu1 %v8868_v27  ;;  %3786 = vmatprep.mubr.f32.mxu0 %v986_v28  ;;  %v562_v27 = vld [vmem:[%s9621_s8 + $0x870] sm:$0x3]  ;;  %v1046_v28 = vrot.slane %v261_v15, %v9646_v25  ;;  %v8912_v7 = vpack.c.bf16 %v568_v61, %v372_v60  ;;  %v572_v15 = vld [vmem:[%s9621_s8 + $0x8c0] sm:$0x3]  ;;  %v587_v60 = vld [vmem:[%s9621_s8 + $0x938] sm:$0x3] }
  0xec   : > { %8871 = vmatprep.subr.bf16.mxu0 %v8870_v29  ;;  %3856 = vmatprep.mubr.f32.mxu1 %v987_v30  ;;  %v369_v29 = vld [vmem:[%s9621_s8 + $0x268] sm:$0xff]  ;;  %v8900_v36 = vpack.c.bf16 %v562_v27, %v366_v26  ;;  %v267_v61 = vld [vmem:[%s9614_s10 + $0xc0] sm:$0xff] }
  0xed   : > { %8875 = vmatprep.subr.bf16.mxu1 %v8874_v31  ;;  %v565_v30 = vld [vmem:[%s9621_s8 + $0x888] sm:$0x3]  ;;  %v1053_v31 = vrot.slane %v1039_v22, %v9646_v25  ;;  %v383_v22 = vld [vmem:[%s9621_s8 + $0x2d8] sm:$0xff] }
  0xee   : > { %v8902_v38 = vpack.c.bf16 %v565_v30, %v369_v29 }
  0xef   : > { %v1055_v39 = vcombine.high %v1053_v31, %v1053_v31 }
  0xf1   : > { %3787 = vmatmul.mubr.f32.vlgmr.msra.gmra.mrb[28].mxu0 %v978_v18  ;;  %v1037_v18 = vcombine.high %v1029_v9, %v1029_v9 }
  0xf2   : > { %3857 = vmatmul.mubr.f32.vlgmr.msra.gmra.mrb[28].mxu1 %v985_v21  ;;  %8873 = vmatpush1.bf16.xpose.msra.mxu0 %v8872_v44  ;;  %v8898_v21 = vpack.c.bf16 %v563_v14, %v367_v13  ;;  %v370_v44 = vld [vmem:[%s9621_s8 + $0x270] sm:$0xff]  ;;  %v1090_v13 = vcombine.high %v264_v6, %v264_v6  ;;  %v376_v14 = vld [vmem:[%s9621_s8 + $0x2a0] sm:$0xff] }
  0xf3   : > { %8877 = vmatpush1.bf16.xpose.msra.mxu1 %v8876_v45  ;;  %3926 = vmatprep.mubr.f32.mxu0 %v1003_v46  ;;  %v566_v45 = vld [vmem:[%s9621_s8 + $0x890] sm:$0x3]  ;;  %v1063_v46 = vrot.slane %v262_v34, %v9646_v25  ;;  %v8920_v26 = vpack.c.bf16 %v572_v15, %v376_v14  ;;  %v576_v34 = vld [vmem:[%s9621_s8 + $0x8e0] sm:$0x3]  ;;  %v591_v14 = vld [vmem:[%s9621_s8 + $0x958] sm:$0x3] }
  0xf4   : > { %8879 = vmatprep.subr.bf16.mxu0 %v8878_v47  ;;  %3996 = vmatprep.mubr.f32.mxu1 %v1004_v48  ;;  %v373_v47 = vld [vmem:[%s9621_s8 + $0x288] sm:$0xff]  ;;  %v8908_v54 = vpack.c.bf16 %v566_v45, %v370_v44  ;;  %v268_v15 = vld [vmem:[%s9614_s10 + $0xc8] sm:$0xff] }
  0xf5   : > { %8883 = vmatprep.subr.bf16.mxu1 %v8882_v49  ;;  %v569_v48 = vld [vmem:[%s9621_s8 + $0x8a8] sm:$0x3]  ;;  %v1070_v49 = vrot.slane %v1056_v41, %v9646_v25  ;;  %v387_v41 = vld [vmem:[%s9621_s8 + $0x2f8] sm:$0xff] }
  0xf6   : > { %v8910_v56 = vpack.c.bf16 %v569_v48, %v373_v47 }
  0xf7   : > { %v1072_v57 = vcombine.high %v1070_v49, %v1070_v49 }
  0xf9   : > { %3927 = vmatmul.mubr.f32.vlgmr.msra.gmra.mrb[30].mxu0 %v995_v37  ;;  %v1054_v37 = vcombine.high %v1046_v28, %v1046_v28 }
  0xfa   : > { %3997 = vmatmul.mubr.f32.vlgmr.msra.gmra.mrb[30].mxu1 %v1002_v40  ;;  %8881 = vmatpush1.bf16.xpose.msra.mxu0 %v8880_v62  ;;  %v8906_v40 = vpack.c.bf16 %v567_v33, %v371_v32  ;;  %v374_v62 = vld [vmem:[%s9621_s8 + $0x290] sm:$0xff]  ;;  %v1107_v32 = vcombine.high %v265_v24, %v265_v24  ;;  %v380_v33 = vld [vmem:[%s9621_s8 + $0x2c0] sm:$0xff] }
  0xfb   : > { %8885 = vmatpush1.bf16.xpose.msra.mxu1 %v8884_v63  ;;  %4066 = vmatprep.mubr.f32.mxu0 %v1020_v0  ;;  %v570_v63 = vld [vmem:[%s9621_s8 + $0x8b0] sm:$0x3]  ;;  %v1080_v0 = vrot.slane %v263_v52, %v9646_v25  ;;  %v8928_v44 = vpack.c.bf16 %v576_v34, %v380_v33  ;;  %v580_v52 = vld [vmem:[%s9621_s8 + $0x900] sm:$0x3]  ;;  %v595_v33 = vld [vmem:[%s9621_s8 + $0x978] sm:$0x3] }
  0xfc   : > { %8887 = vmatprep.subr.bf16.mxu0 %v8886_v1  ;;  %4136 = vmatprep.mubr.f32.mxu1 %v1021_v2  ;;  %v377_v1 = vld [vmem:[%s9621_s8 + $0x2a8] sm:$0xff]  ;;  %v8916_v8 = vpack.c.bf16 %v570_v63, %v374_v62 }
  0xfd   : > { %8891 = vmatprep.subr.bf16.mxu1 %v8890_v3  ;;  %v573_v2 = vld [vmem:[%s9621_s8 + $0x8c8] sm:$0x3]  ;;  %v1087_v3 = vrot.slane %v1073_v59, %v9646_v25  ;;  %v391_v59 = vld [vmem:[%s9621_s8 + $0x318] sm:$0xff] }
  0xfe   : > { %v8918_v10 = vpack.c.bf16 %v573_v2, %v377_v1  ;;  %v269_v34 = vld [vmem:[%s9614_s10 + $0xd0] sm:$0xff] }
  0xff   : > { %v1089_v11 = vcombine.high %v1087_v3, %v1087_v3 }
 0x101   : > { %4067 = vmatmul.mubr.f32.vlgmr.msra.gmra.mrb[32].mxu0 %v1012_v55  ;;  %v1071_v55 = vcombine.high %v1063_v46, %v1063_v46 }
 0x102   : > { %4137 = vmatmul.mubr.f32.vlgmr.msra.gmra.mrb[32].mxu1 %v1019_v58  ;;  %8889 = vmatpush1.bf16.xpose.msra.mxu0 %v8888_v16  ;;  %v8914_v58 = vpack.c.bf16 %v571_v51, %v375_v50  ;;  %v378_v16 = vld [vmem:[%s9621_s8 + $0x2b0] sm:$0xff]  ;;  %v1124_v50 = vcombine.high %v266_v43, %v266_v43  ;;  %v384_v51 = vld [vmem:[%s9621_s8 + $0x2e0] sm:$0xff] }
 0x103   : > { %8893 = vmatpush1.bf16.xpose.msra.mxu1 %v8892_v17  ;;  %4206 = vmatprep.mubr.f32.mxu0 %v1037_v18  ;;  %v574_v17 = vld [vmem:[%s9621_s8 + $0x8d0] sm:$0x3]  ;;  %v1097_v18 = vrot.slane %v264_v6, %v9646_v25  ;;  %v8936_v62 = vpack.c.bf16 %v580_v52, %v384_v51  ;;  %v584_v6 = vld [vmem:[%s9621_s8 + $0x920] sm:$0x3]  ;;  %v599_v51 = vld [vmem:[%s9621_s8 + $0x998] sm:$0x3] }
 0x104   : > { %8895 = vmatprep.subr.bf16.mxu0 %v8894_v19  ;;  %4276 = vmatprep.mubr.f32.mxu1 %v1038_v20  ;;  %v381_v19 = vld [vmem:[%s9621_s8 + $0x2c8] sm:$0xff]  ;;  %v8924_v27 = vpack.c.bf16 %v574_v17, %v378_v16 }
 0x105   : > { %8899 = vmatprep.subr.bf16.mxu1 %v8898_v21  ;;  %v577_v20 = vld [vmem:[%s9621_s8 + $0x8e8] sm:$0x3]  ;;  %v1104_v21 = vrot.slane %v1090_v13, %v9646_v25  ;;  %v395_v13 = vld [vmem:[%s9621_s8 + $0x338] sm:$0xff] }
 0x106   : > { %v8926_v29 = vpack.c.bf16 %v577_v20, %v381_v19  ;;  %v270_v52 = vld [vmem:[%s9614_s10 + $0xd8] sm:$0xff] }
 0x107   : > { %v1106_v30 = vcombine.high %v1104_v21, %v1104_v21 }
 0x109   : > { %4207 = vmatmul.mubr.f32.vlgmr.msra.gmra.mrb[34].mxu0 %v1029_v9  ;;  %v1088_v9 = vcombine.high %v1080_v0, %v1080_v0 }
 0x10a   : > { %4277 = vmatmul.mubr.f32.vlgmr.msra.gmra.mrb[34].mxu1 %v1036_v12  ;;  %8897 = vmatpush1.bf16.xpose.msra.mxu0 %v8896_v35  ;;  %v8922_v12 = vpack.c.bf16 %v575_v5, %v379_v4  ;;  %v382_v35 = vld [vmem:[%s9621_s8 + $0x2d0] sm:$0xff]  ;;  %v1141_v4 = vcombine.high %v267_v61, %v267_v61  ;;  %v388_v5 = vld [vmem:[%s9621_s8 + $0x300] sm:$0xff] }
 0x10b   : > { %8901 = vmatpush1.bf16.xpose.msra.mxu1 %v8900_v36  ;;  %4346 = vmatprep.mubr.f32.mxu0 %v1054_v37  ;;  %v578_v36 = vld [vmem:[%s9621_s8 + $0x8f0] sm:$0x3]  ;;  %v1114_v37 = vrot.slane %v265_v24, %v9646_v25  ;;  %v8944_v16 = vpack.c.bf16 %v584_v6, %v388_v5  ;;  %v588_v24 = vld [vmem:[%s9621_s8 + $0x940] sm:$0x3]  ;;  %v603_v5 = vld [vmem:[%s9621_s8 + $0x9b8] sm:$0x3] }
 0x10c   : > { %8903 = vmatprep.subr.bf16.mxu0 %v8902_v38  ;;  %4416 = vmatprep.mubr.f32.mxu1 %v1055_v39  ;;  %v385_v38 = vld [vmem:[%s9621_s8 + $0x2e8] sm:$0xff]  ;;  %v8932_v45 = vpack.c.bf16 %v578_v36, %v382_v35  ;;  %v271_v6 = vld [vmem:[%s9614_s10 + $0xe0] sm:$0xff] }
 0x10d   : > { %8907 = vmatprep.subr.bf16.mxu1 %v8906_v40  ;;  %v581_v39 = vld [vmem:[%s9621_s8 + $0x908] sm:$0x3]  ;;  %v1121_v40 = vrot.slane %v1107_v32, %v9646_v25  ;;  %v399_v32 = vld [vmem:[%s9621_s8 + $0x358] sm:$0xff] }
 0x10e   : > { %v8934_v47 = vpack.c.bf16 %v581_v39, %v385_v38 }
 0x10f   : > { %v1123_v48 = vcombine.high %v1121_v40, %v1121_v40 }
 0x111   : > { %4347 = vmatmul.mubr.f32.vlgmr.msra.gmra.mrb[36].mxu0 %v1046_v28  ;;  %v1105_v28 = vcombine.high %v1097_v18, %v1097_v18 }
 0x112   : > { %4417 = vmatmul.mubr.f32.vlgmr.msra.gmra.mrb[36].mxu1 %v1053_v31  ;;  %8905 = vmatpush1.bf16.xpose.msra.mxu0 %v8904_v53  ;;  %v8930_v31 = vpack.c.bf16 %v579_v23, %v383_v22  ;;  %v386_v53 = vld [vmem:[%s9621_s8 + $0x2f0] sm:$0xff]  ;;  %v1158_v22 = vcombine.high %v268_v15, %v268_v15  ;;  %v392_v23 = vld [vmem:[%s9621_s8 + $0x320] sm:$0xff] }
 0x113   : > { %8909 = vmatpush1.bf16.xpose.msra.mxu1 %v8908_v54  ;;  %4486 = vmatprep.mubr.f32.mxu0 %v1071_v55  ;;  %v582_v54 = vld [vmem:[%s9621_s8 + $0x910] sm:$0x3]  ;;  %v1131_v55 = vrot.slane %v266_v43, %v9646_v25  ;;  %v8952_v35 = vpack.c.bf16 %v588_v24, %v392_v23  ;;  %v592_v43 = vld [vmem:[%s9621_s8 + $0x960] sm:$0x3] }
 0x114   : > { %8911 = vmatprep.subr.bf16.mxu0 %v8910_v56  ;;  %4556 = vmatprep.mubr.f32.mxu1 %v1072_v57  ;;  %v389_v56 = vld [vmem:[%s9621_s8 + $0x308] sm:$0xff]  ;;  %v8940_v63 = vpack.c.bf16 %v582_v54, %v386_v53 }
 0x115   : > { %8915 = vmatprep.subr.bf16.mxu1 %v8914_v58  ;;  %v585_v57 = vld [vmem:[%s9621_s8 + $0x928] sm:$0x3]  ;;  %v1138_v58 = vrot.slane %v1124_v50, %v9646_v25  ;;  %v403_v50 = vld [vmem:[%s9621_s8 + $0x378] sm:$0xff] }
 0x116   : > { %v8942_v1 = vpack.c.bf16 %v585_v57, %v389_v56 }
 0x117   : > { %v1140_v2 = vcombine.high %v1138_v58, %v1138_v58 }
 0x119   : > { %4487 = vmatmul.mubr.f32.vlgmr.msra.gmra.mrb[38].mxu0 %v1063_v46  ;;  %v1122_v46 = vcombine.high %v1114_v37, %v1114_v37 }
 0x11a   : > { %4557 = vmatmul.mubr.f32.vlgmr.msra.gmra.mrb[38].mxu1 %v1070_v49  ;;  %8913 = vmatpush1.bf16.xpose.msra.mxu0 %v8912_v7  ;;  %v8938_v49 = vpack.c.bf16 %v583_v42, %v387_v41  ;;  %v390_v7 = vld [vmem:[%s9621_s8 + $0x310] sm:$0xff]  ;;  %v1175_v41 = vcombine.high %v269_v34, %v269_v34  ;;  %v396_v42 = vld [vmem:[%s9621_s8 + $0x340] sm:$0xff] }
 0x11b   : > { %8917 = vmatpush1.bf16.xpose.msra.mxu1 %v8916_v8  ;;  %4626 = vmatprep.mubr.f32.mxu0 %v1088_v9  ;;  %v586_v8 = vld [vmem:[%s9621_s8 + $0x930] sm:$0x3]  ;;  %v1148_v9 = vrot.slane %v267_v61, %v9646_v25  ;;  %v8960_v53 = vpack.c.bf16 %v592_v43, %v396_v42  ;;  %v596_v61 = vld [vmem:[%s9621_s8 + $0x980] sm:$0x3] }
 0x11c   : > { %8919 = vmatprep.subr.bf16.mxu0 %v8918_v10  ;;  %4696 = vmatprep.mubr.f32.mxu1 %v1089_v11  ;;  %v393_v10 = vld [vmem:[%s9621_s8 + $0x328] sm:$0xff]  ;;  %v8948_v17 = vpack.c.bf16 %v586_v8, %v390_v7 }
 0x11d   : > { %8923 = vmatprep.subr.bf16.mxu1 %v8922_v12  ;;  %v589_v11 = vld [vmem:[%s9621_s8 + $0x948] sm:$0x3]  ;;  %v1155_v12 = vrot.slane %v1141_v4, %v9646_v25  ;;  %v407_v4 = vld [vmem:[%s9621_s8 + $0x398] sm:$0xff] }
 0x11e   : > { %v8950_v19 = vpack.c.bf16 %v589_v11, %v393_v10 }
 0x11f   : > { %v1157_v20 = vcombine.high %v1155_v12, %v1155_v12 }
 0x121   : > { %4627 = vmatmul.mubr.f32.vlgmr.msra.gmra.mrb[40].mxu0 %v1080_v0  ;;  %v1139_v0 = vcombine.high %v1131_v55, %v1131_v55 }
 0x122   : > { %4697 = vmatmul.mubr.f32.vlgmr.msra.gmra.mrb[40].mxu1 %v1087_v3  ;;  %8921 = vmatpush1.bf16.xpose.msra.mxu0 %v8920_v26  ;;  %v8946_v3 = vpack.c.bf16 %v587_v60, %v391_v59  ;;  %v394_v26 = vld [vmem:[%s9621_s8 + $0x330] sm:$0xff]  ;;  %v1192_v59 = vcombine.high %v270_v52, %v270_v52  ;;  %v400_v60 = vld [vmem:[%s9621_s8 + $0x360] sm:$0xff] }
 0x123   : > { %8925 = vmatpush1.bf16.xpose.msra.mxu1 %v8924_v27  ;;  %4766 = vmatprep.mubr.f32.mxu0 %v1105_v28  ;;  %v590_v27 = vld [vmem:[%s9621_s8 + $0x950] sm:$0x3]  ;;  %v1165_v28 = vrot.slane %v268_v15, %v9646_v25  ;;  %v8968_v7 = vpack.c.bf16 %v596_v61, %v400_v60  ;;  %v600_v15 = vld [vmem:[%s9621_s8 + $0x9a0] sm:$0x3] }
 0x124   : > { %8927 = vmatprep.subr.bf16.mxu0 %v8926_v29  ;;  %4836 = vmatprep.mubr.f32.mxu1 %v1106_v30  ;;  %v397_v29 = vld [vmem:[%s9621_s8 + $0x348] sm:$0xff]  ;;  %v8956_v36 = vpack.c.bf16 %v590_v27, %v394_v26 }
 0x125   : > { %8931 = vmatprep.subr.bf16.mxu1 %v8930_v31  ;;  %v593_v30 = vld [vmem:[%s9621_s8 + $0x968] sm:$0x3]  ;;  %v1172_v31 = vrot.slane %v1158_v22, %v9646_v25 }
 0x126   : > { %v8958_v38 = vpack.c.bf16 %v593_v30, %v397_v29  ;;  %v605_v22 = vld [vmem:[%s9621_s8 + $0x9c8] sm:$0x3]  ;;  %v607_v29 = vld [vmem:[%s9621_s8 + $0x9d8] sm:$0x3] }
 0x127   : > { %v1174_v39 = vcombine.high %v1172_v31, %v1172_v31  ;;  %v272_v30 = vld [vmem:[%s9614_s10 + $0xe8] sm:$0xff] }
 0x128   : > { %v1233_v42 = vrot.slane %v272_v30, %v9646_v25 }
 0x129   : > { %4767 = vmatmul.mubr.f32.vlgmr.msra.gmra.mrb[42].mxu0 %v1097_v18  ;;  %v1156_v18 = vcombine.high %v1148_v9, %v1148_v9 }
 0x12a   : > { %4837 = vmatmul.mubr.f32.vlgmr.msra.gmra.mrb[42].mxu1 %v1104_v21  ;;  %8929 = vmatpush1.bf16.xpose.msra.mxu0 %v8928_v44  ;;  %v8954_v21 = vpack.c.bf16 %v591_v14, %v395_v13  ;;  %v398_v44 = vld [vmem:[%s9621_s8 + $0x350] sm:$0xff]  ;;  %v1209_v13 = vcombine.high %v271_v6, %v271_v6  ;;  %v404_v14 = vld [vmem:[%s9621_s8 + $0x380] sm:$0xff] }
 0x12b   : > { %8933 = vmatpush1.bf16.xpose.msra.mxu1 %v8932_v45  ;;  %4906 = vmatprep.mubr.f32.mxu0 %v1122_v46  ;;  %v594_v45 = vld [vmem:[%s9621_s8 + $0x970] sm:$0x3]  ;;  %v1182_v46 = vrot.slane %v269_v34, %v9646_v25 }
 0x12c   : > { %8935 = vmatprep.subr.bf16.mxu0 %v8934_v47  ;;  %4976 = vmatprep.mubr.f32.mxu1 %v1123_v48  ;;  %v401_v47 = vld [vmem:[%s9621_s8 + $0x368] sm:$0xff]  ;;  %v8964_v54 = vpack.c.bf16 %v594_v45, %v398_v44  ;;  %v1223_v23 = vrot.slane %v1209_v13, %v9646_v25 }
 0x12d   : > { %8939 = vmatprep.subr.bf16.mxu1 %v8938_v49  ;;  %v597_v48 = vld [vmem:[%s9621_s8 + $0x988] sm:$0x3]  ;;  %v1189_v49 = vrot.slane %v1175_v41, %v9646_v25  ;;  %v606_v41 = vld [vmem:[%s9621_s8 + $0x9d0] sm:$0x3] }
 0x12e   : > { %v8966_v56 = vpack.c.bf16 %v597_v48, %v401_v47  ;;  %v413_v45 = vld [vmem:[%s9621_s8 + $0x3c8] sm:$0xff] }
 0x12f   : > { %v1191_v57 = vcombine.high %v1189_v49, %v1189_v49  ;;  %v274_v13 = vld [vmem:[%s9614_s10 + $0xf8] sm:$0xff] }
 0x131   : > { %4907 = vmatmul.mubr.f32.vlgmr.msra.gmra.mrb[44].mxu0 %v1114_v37  ;;  %v1173_v37 = vcombine.high %v1165_v28, %v1165_v28 }
 0x132   : > { %4977 = vmatmul.mubr.f32.vlgmr.msra.gmra.mrb[44].mxu1 %v1121_v40  ;;  %8937 = vmatpush1.bf16.xpose.msra.mxu0 %v8936_v62  ;;  %v8962_v40 = vpack.c.bf16 %v595_v33, %v399_v32  ;;  %v402_v62 = vld [vmem:[%s9621_s8 + $0x370] sm:$0xff] }
 0x133   : > { %8941 = vmatpush1.bf16.xpose.msra.mxu1 %v8940_v63  ;;  %5046 = vmatprep.mubr.f32.mxu0 %v1139_v0  ;;  %v598_v63 = vld [vmem:[%s9621_s8 + $0x990] sm:$0x3]  ;;  %v1199_v0 = vrot.slane %v270_v52, %v9646_v25  ;;  %v611_v52 = vld [vmem:[%s9621_s8 + $0x9f8] sm:$0x3] }
 0x134   : > { %8943 = vmatprep.subr.bf16.mxu0 %v8942_v1  ;;  %5116 = vmatprep.mubr.f32.mxu1 %v1140_v2  ;;  %v405_v1 = vld [vmem:[%s9621_s8 + $0x388] sm:$0xff]  ;;  %v8972_v8 = vpack.c.bf16 %v598_v63, %v402_v62  ;;  %v412_v62 = vld [vmem:[%s9621_s8 + $0x3c0] sm:$0xff] }
 0x135   : > { %8947 = vmatprep.subr.bf16.mxu1 %v8946_v3  ;;  %v601_v2 = vld [vmem:[%s9621_s8 + $0x9a8] sm:$0x3]  ;;  %v1206_v3 = vrot.slane %v1192_v59, %v9646_v25  ;;  %v608_v63 = vld [vmem:[%s9621_s8 + $0x9e0] sm:$0x3] }
 0x136   : > { %v8974_v10 = vpack.c.bf16 %v601_v2, %v405_v1  ;;  %v610_v1 = vld [vmem:[%s9621_s8 + $0x9f0] sm:$0x3] }
 0x137   : > { %v1208_v11 = vcombine.high %v1206_v3, %v1206_v3 }
 0x139   : > { %5047 = vmatmul.mubr.f32.vlgmr.msra.gmra.mrb[46].mxu0 %v1131_v55  ;;  %v1190_v55 = vcombine.high %v1182_v46, %v1182_v46 }
 0x13a   : > { %5117 = vmatmul.mubr.f32.vlgmr.msra.gmra.mrb[46].mxu1 %v1138_v58  ;;  %8945 = vmatpush1.bf16.xpose.msra.mxu0 %v8944_v16  ;;  %v8970_v58 = vpack.c.bf16 %v599_v51, %v403_v50  ;;  %v406_v16 = vld [vmem:[%s9621_s8 + $0x390] sm:$0xff]  ;;  %v415_v51 = vld [vmem:[%s9621_s8 + $0x3d8] sm:$0xff] }
 0x13b   : > { %8949 = vmatpush1.bf16.xpose.msra.mxu1 %v8948_v17  ;;  %5186 = vmatprep.mubr.f32.mxu0 %v1156_v18  ;;  %v602_v17 = vld [vmem:[%s9621_s8 + $0x9b0] sm:$0x3]  ;;  %v1216_v18 = vrot.slane %v271_v6, %v9646_v25  ;;  %v8994_v60 = vpack.c.bf16 %v611_v52, %v415_v51  ;;  %v613_v6 = vld [vmem:[%s9621_s8 + $0xa08] sm:$0x3] }
 0x13c   : > { %8951 = vmatprep.subr.bf16.mxu0 %v8950_v19  ;;  %5256 = vmatprep.mubr.f32.mxu1 %v1157_v20  ;;  %v8980_v32 = vpack.c.bf16 %v602_v17, %v406_v16 }
 0x13d   : > { %8955 = vmatprep.subr.bf16.mxu1 %v8954_v21  ;;  %v409_v21 = vld [vmem:[%s9621_s8 + $0x3a8] sm:$0xff]  ;;  %v1224_v33 = vcombine.high %v1216_v18, %v1216_v18 }
 0x13e   : > { %v8982_v34 = vpack.c.bf16 %v605_v22, %v409_v21  ;;  %v1260_v21 = vcombine.high %v274_v13, %v274_v13  ;;  %v416_v22 = vld [vmem:[%s9621_s8 + $0x3e0] sm:$0xff] }
 0x141   : > { %5187 = vmatmul.mubr.f32.vlgmr.msra.gmra.mrb[48].mxu0 %v1148_v9  ;;  %v1207_v9 = vcombine.high %v1199_v0, %v1199_v0 }
 0x142   : > { %5257 = vmatmul.mubr.f32.vlgmr.msra.gmra.mrb[48].mxu1 %v1155_v12  ;;  %8953 = vmatpush1.bf16.xpose.msra.mxu0 %v8952_v35  ;;  %v8978_v12 = vpack.c.bf16 %v603_v5, %v407_v4  ;;  %v1225_v35 = vcombine.high %v1223_v23, %v1223_v23  ;;  %v417_v5 = vld [vmem:[%s9621_s8 + $0x3e8] sm:$0xff] }
 0x143   : > { %8957 = vmatpush1.bf16.xpose.msra.mxu1 %v8956_v36  ;;  %5326 = vmatprep.mubr.f32.mxu0 %v1173_v37  ;;  %v1226_v37 = vcombine.high %v272_v30, %v272_v30  ;;  %v421_v30 = vld [vmem:[%s9621_s8 + $0x408] sm:$0xff] }
 0x144   : > { %8959 = vmatprep.subr.bf16.mxu0 %v8958_v38  ;;  %5396 = vmatprep.mubr.f32.mxu1 %v1174_v39  ;;  %v408_v38 = vld [vmem:[%s9621_s8 + $0x3a0] sm:$0xff] }
 0x145   : > { %8963 = vmatprep.subr.bf16.mxu1 %v8962_v40  ;;  %v604_v39 = vld [vmem:[%s9621_s8 + $0x9c0] sm:$0x3]  ;;  %v410_v40 = vld [vmem:[%s9621_s8 + $0x3b0] sm:$0xff]  ;;  %v1240_v47 = vrot.slane %v1226_v37, %v9646_v25  ;;  %v619_v37 = vld [vmem:[%s9621_s8 + $0xa38] sm:$0x3] }
 0x147   : > { %v1242_v59 = vcombine.high %v1240_v47, %v1240_v47 }
 0x149   : > { %5327 = vmatmul.mubr.f32.vlgmr.msra.gmra.mrb[50].mxu0 %v1165_v28  ;;  %v411_v28 = vld [vmem:[%s9621_s8 + $0x3b8] sm:$0xff] }
 0x14a   : > { %5397 = vmatmul.mubr.f32.vlgmr.msra.gmra.mrb[50].mxu1 %v1172_v31  ;;  %8961 = vmatpush1.bf16.xpose.msra.mxu0 %v8960_v53  ;;  %v8976_v31 = vpack.c.bf16 %v600_v15, %v404_v14  ;;  %v8986_v36 = vpack.c.bf16 %v607_v29, %v411_v28  ;;  %v273_v53 = vld [vmem:[%s9614_s10 + $0xf0] sm:$0xff]  ;;  %v8992_v14 = vpack.c.bf16 %v608_v63, %v412_v62  ;;  %v276_v62 = vld [vmem:[%s9614_s10 + $0x108] sm:$0xff] }
 0x14b   : > { %8965 = vmatpush1.bf16.xpose.msra.mxu1 %v8964_v54  ;;  %5466 = vmatprep.mubr.f32.mxu0 %v1190_v55  ;;  %v8984_v54 = vpack.c.bf16 %v604_v39, %v408_v38  ;;  %v8988_v55 = vpack.c.bf16 %v606_v41, %v410_v40  ;;  %v1243_v61 = vcombine.high %v273_v53, %v273_v53  ;;  %v275_v38 = vld [vmem:[%s9614_s10 + $0x100] sm:$0xff] }
 0x14c   : > { %8967 = vmatprep.subr.bf16.mxu0 %v8966_v56  ;;  %5536 = vmatprep.mubr.f32.mxu1 %v1191_v57  ;;  %v1241_v57 = vcombine.high %v1233_v42, %v1233_v42  ;;  %v1250_v2 = vrot.slane %v273_v53, %v9646_v25  ;;  %v1284_v51 = vrot.slane %v275_v38, %v9646_v25 }
 0x14d   : > { %8971 = vmatprep.subr.bf16.mxu1 %v8970_v58 }
 0x14e   : > { %v1258_v17 = vcombine.high %v1250_v2, %v1250_v2 }
 0x151   : > { %5467 = vmatmul.mubr.f32.vlgmr.msra.gmra.mrb[52].mxu0 %v1182_v46  ;;  %v609_v46 = vld [vmem:[%s9621_s8 + $0x9e8] sm:$0x3] }
 0x152   : > { %5537 = vmatmul.mubr.f32.vlgmr.msra.gmra.mrb[52].mxu1 %v1189_v49  ;;  %8969 = vmatpush1.bf16.xpose.msra.mxu0 %v8968_v7  ;;  %v8990_v58 = vpack.c.bf16 %v609_v46, %v413_v45  ;;  %v1257_v7 = vrot.slane %v1243_v61, %v9646_v25  ;;  %v1277_v46 = vcombine.high %v275_v38, %v275_v38  ;;  %v623_v61 = vld [vmem:[%s9621_s8 + $0xa58] sm:$0x3] }
 0x153   : > { %8973 = vmatpush1.bf16.xpose.msra.mxu1 %v8972_v8  ;;  %5606 = vmatprep.mubr.f32.mxu0 %v1207_v9 }
 0x154   : > { %8975 = vmatprep.subr.bf16.mxu0 %v8974_v10  ;;  %v1828_v19 = vpop.f32.mrb[0].mxu0  ;;  %5676 = vmatprep.mubr.f32.mxu1 %v1208_v11  ;;  %v419_v11 = vld [vmem:[%s9621_s8 + $0x3f8] sm:$0xff] }
 0x155   : > { %v1898_v20 = vpop.f32.mrb[0].mxu1  ;;  %8979 = vmatprep.subr.bf16.mxu1 %v8978_v12  ;;  %v1830_v26 = vpop.f32.mrb[1].mxu0  ;;  %v615_v12 = vld [vmem:[%s9621_s8 + $0xa18] sm:$0x3] }
 0x156   : > { %v1899_v24 = vadd.f32 %v1898_v20, %v1828_v19  ;;  %v1900_v27 = vpop.f32.mrb[1].mxu1  ;;  %v1259_v19 = vcombine.high %v1257_v7, %v1257_v7  ;;  %v9002_v20 = vpack.c.bf16 %v615_v12, %v419_v11  ;;  %v614_v26 = vld [vmem:[%s9621_s8 + $0xa10] sm:$0x3]  ;;  %v1301_v11 = vrot.slane %v276_v62, %v9646_v25 }
 0x157   : > { %v1267_v27 = vrot.slane %v274_v13, %v9646_v25 }
 0x159   : > { %5607 = vmatmul.mubr.f32.vlgmr.msra.gmra.mrb[54].mxu0 %v1199_v0  ;;  %v414_v0 = vld [vmem:[%s9621_s8 + $0x3d0] sm:$0xff] }
 0x15a   : > { %5677 = vmatmul.mubr.f32.vlgmr.msra.gmra.mrb[54].mxu1 %v1206_v3  ;;  %8977 = vmatpush1.bf16.xpose.msra.mxu0 %v8976_v31  ;;  %v8996_v15 = vpack.c.bf16 %v610_v1, %v414_v0  ;;  %v617_v31 = vld [vmem:[%s9621_s8 + $0xa28] sm:$0x3] }
 0x15b   : > { %8981 = vmatpush1.bf16.xpose.msra.mxu1 %v8980_v32  ;;  %5746 = vmatprep.mubr.f32.mxu0 %v1224_v33  ;;  %v1274_v32 = vrot.slane %v1260_v21, %v9646_v25  ;;  %v627_v21 = vld [vmem:[%s9621_s8 + $0xa78] sm:$0x3] }
 0x15c   : > { %8983 = vmatprep.subr.bf16.mxu0 %v8982_v34  ;;  %v1968_v43 = vpop.f32.mrb[2].mxu0  ;;  %5816 = vmatprep.mubr.f32.mxu1 %v1225_v35 }
 0x15d   : > { %v2038_v44 = vpop.f32.mrb[2].mxu1  ;;  %8987 = vmatprep.subr.bf16.mxu1 %v8986_v36  ;;  %v1969_v48 = vadd.f32 %v1968_v43, %v1899_v24  ;;  %v1970_v49 = vpop.f32.mrb[3].mxu0  ;;  %v418_v24 = vld [vmem:[%s9621_s8 + $0x3f0] sm:$0xff]  ;;  %v423_v36 = vld [vmem:[%s9621_s8 + $0x418] sm:$0xff]  ;;  %v9006_v43 = vpack.c.bf16 %v617_v31, %v421_v30 }
 0x15e   : > { %v2040_v50 = vpop.f32.mrb[3].mxu1  ;;  %v9004_v40 = vpack.c.bf16 %v614_v26, %v418_v24  ;;  %v9010_v45 = vpack.c.bf16 %v619_v37, %v423_v36  ;;  %v422_v49 = vld [vmem:[%s9621_s8 + $0x410] sm:$0xff] }
 0x15f   : > { %v2039_v56 = vadd.f32 %v2038_v44, %v1969_v48  ;;  %v1276_v44 = vcombine.high %v1274_v32, %v1274_v32  ;;  %v616_v48 = vld [vmem:[%s9621_s8 + $0xa20] sm:$0x3]  ;;  %v618_v50 = vld [vmem:[%s9621_s8 + $0xa30] sm:$0x3] }
 0x160   : > { %v9012_v0 = vpack.c.bf16 %v618_v50, %v422_v49 }
 0x161   : > { %5747 = vmatmul.mubr.f32.vlgmr.msra.gmra.mrb[56].mxu0 %v1216_v18  ;;  %v8998_v18 = vpack.c.bf16 %v613_v6, %v417_v5  ;;  %v1294_v6 = vcombine.high %v276_v62, %v276_v62 }
 0x162   : > { %5817 = vmatmul.mubr.f32.vlgmr.msra.gmra.mrb[56].mxu1 %v1223_v23  ;;  %8985 = vmatpush1.bf16.xpose.msra.mxu0 %v8984_v54  ;;  %v612_v23 = vld [vmem:[%s9621_s8 + $0xa00] sm:$0x3]  ;;  %v425_v54 = vld [vmem:[%s9621_s8 + $0x428] sm:$0xff] }
 0x163   : > { %8989 = vmatpush1.bf16.xpose.msra.mxu1 %v8988_v55  ;;  %5886 = vmatprep.mubr.f32.mxu0 %v1241_v57  ;;  %v9000_v39 = vpack.c.bf16 %v612_v23, %v416_v22  ;;  %v621_v55 = vld [vmem:[%s9621_s8 + $0xa48] sm:$0x3] }
 0x164   : > { %8991 = vmatprep.subr.bf16.mxu0 %v8990_v58  ;;  %v2108_v3 = vpop.f32.mrb[4].mxu0  ;;  %5956 = vmatprep.mubr.f32.mxu1 %v1242_v59  ;;  %v277_v22 = vld [vmem:[%s9614_s10 + $0x110] sm:$0xff] }
 0x165   : > { %v2178_v4 = vpop.f32.mrb[4].mxu1  ;;  %8995 = vmatprep.subr.bf16.mxu1 %v8994_v60  ;;  %v2109_v8 = vadd.f32 %v2108_v3, %v2039_v56  ;;  %v2110_v9 = vpop.f32.mrb[5].mxu0  ;;  %v1291_v56 = vrot.slane %v1277_v46, %v9646_v25  ;;  %v427_v60 = vld [vmem:[%s9621_s8 + $0x438] sm:$0xff]  ;;  %v9014_v3 = vpack.c.bf16 %v621_v55, %v425_v54  ;;  %v1311_v31 = vcombine.high %v277_v22, %v277_v22 }
 0x166   : > { %v2180_v10 = vpop.f32.mrb[5].mxu1  ;;  %v9018_v5 = vpack.c.bf16 %v623_v61, %v427_v60  ;;  %v426_v9 = vld [vmem:[%s9621_s8 + $0x430] sm:$0xff]  ;;  %v1318_v36 = vrot.slane %v277_v22, %v9646_v25  ;;  %v631_v46 = vld [vmem:[%s9621_s8 + $0xa98] sm:$0x3] }
 0x167   : > { %v2179_v16 = vadd.f32 %v2178_v4, %v2109_v8  ;;  %v1293_v4 = vcombine.high %v1291_v56, %v1291_v56  ;;  %v620_v8 = vld [vmem:[%s9621_s8 + $0xa40] sm:$0x3]  ;;  %v622_v10 = vld [vmem:[%s9621_s8 + $0xa50] sm:$0x3] }
 0x168   : > { %v9020_v24 = vpack.c.bf16 %v622_v10, %v426_v9 }
 0x169   : > { %5887 = vmatmul.mubr.f32.vlgmr.msra.gmra.mrb[58].mxu0 %v1233_v42  ;;  %v1275_v42 = vcombine.high %v1267_v27, %v1267_v27 }
 0x16a   : > { %5957 = vmatmul.mubr.f32.vlgmr.msra.gmra.mrb[58].mxu1 %v1240_v47  ;;  %8993 = vmatpush1.bf16.xpose.msra.mxu0 %v8992_v14  ;;  %v420_v47 = vld [vmem:[%s9621_s8 + $0x400] sm:$0xff]  ;;  %v429_v14 = vld [vmem:[%s9621_s8 + $0x448] sm:$0xff] }
 0x16b   : > { %8997 = vmatpush1.bf16.xpose.msra.mxu1 %v8996_v15  ;;  %6026 = vmatprep.mubr.f32.mxu0 %v1258_v17  ;;  %v9008_v63 = vpack.c.bf16 %v616_v48, %v420_v47  ;;  %v625_v15 = vld [vmem:[%s9621_s8 + $0xa68] sm:$0x3] }
 0x16c   : > { %8999 = vmatprep.subr.bf16.mxu0 %v8998_v18  ;;  %v2248_v28 = vpop.f32.mrb[6].mxu0  ;;  %6096 = vmatprep.mubr.f32.mxu1 %v1259_v19  ;;  %v278_v47 = vld [vmem:[%s9614_s10 + $0x118] sm:$0xff] }
 0x16d   : > { %v2318_v29 = vpop.f32.mrb[6].mxu1  ;;  %9003 = vmatprep.subr.bf16.mxu1 %v9002_v20  ;;  %v2249_v33 = vadd.f32 %v2248_v28, %v2179_v16  ;;  %v2250_v34 = vpop.f32.mrb[7].mxu0  ;;  %v1308_v16 = vrot.slane %v1294_v6, %v9646_v25  ;;  %v431_v20 = vld [vmem:[%s9621_s8 + $0x458] sm:$0xff]  ;;  %v9022_v28 = vpack.c.bf16 %v625_v15, %v429_v14  ;;  %v1328_v55 = vcombine.high %v278_v47, %v278_v47 }
 0x16e   : > { %v2320_v35 = vpop.f32.mrb[7].mxu1  ;;  %v9026_v30 = vpack.c.bf16 %v627_v21, %v431_v20  ;;  %v430_v34 = vld [vmem:[%s9621_s8 + $0x450] sm:$0xff]  ;;  %v1335_v60 = vrot.slane %v278_v47, %v9646_v25  ;;  %v635_v6 = vld [vmem:[%s9621_s8 + $0xab8] sm:$0x3] }
 0x16f   : > { %v2319_v41 = vadd.f32 %v2318_v29, %v2249_v33  ;;  %v1310_v29 = vcombine.high %v1308_v16, %v1308_v16  ;;  %v624_v33 = vld [vmem:[%s9621_s8 + $0xa60] sm:$0x3]  ;;  %v626_v35 = vld [vmem:[%s9621_s8 + $0xa70] sm:$0x3] }
 0x170   : > { %v9028_v49 = vpack.c.bf16 %v626_v35, %v430_v34 }
 0x171   : > { %6027 = vmatmul.mubr.f32.vlgmr.msra.gmra.mrb[60].mxu0 %v1250_v2  ;;  %v1292_v2 = vcombine.high %v1284_v51, %v1284_v51 }
 0x172   : > { %6097 = vmatmul.mubr.f32.vlgmr.msra.gmra.mrb[60].mxu1 %v1257_v7  ;;  %9001 = vmatpush1.bf16.xpose.msra.mxu0 %v9000_v39  ;;  %v424_v7 = vld [vmem:[%s9621_s8 + $0x420] sm:$0xff]  ;;  %v433_v39 = vld [vmem:[%s9621_s8 + $0x468] sm:$0xff] }
 0x173   : > { %9005 = vmatpush1.bf16.xpose.msra.mxu1 %v9004_v40  ;;  %6166 = vmatprep.mubr.f32.mxu0 %v1275_v42  ;;  %v9016_v23 = vpack.c.bf16 %v620_v8, %v424_v7  ;;  %v629_v40 = vld [vmem:[%s9621_s8 + $0xa88] sm:$0x3]  ;;  %v279_v7 = vld [vmem:[%s9614_s10 + $0x120] sm:$0xff] }
 0x174   : > { %9007 = vmatprep.subr.bf16.mxu0 %v9006_v43  ;;  %v2388_v52 = vpop.f32.mrb[8].mxu0  ;;  %6236 = vmatprep.mubr.f32.mxu1 %v1276_v44  ;;  %v1345_v15 = vcombine.high %v279_v7, %v279_v7  ;;  %v1352_v20 = vrot.slane %v279_v7, %v9646_v25 }
 0x175   : > { %v2458_v53 = vpop.f32.mrb[8].mxu1  ;;  %9011 = vmatprep.subr.bf16.mxu1 %v9010_v45  ;;  %v2389_v57 = vadd.f32 %v2388_v52, %v2319_v41  ;;  %v2390_v58 = vpop.f32.mrb[9].mxu0  ;;  %v1325_v41 = vrot.slane %v1311_v31, %v9646_v25  ;;  %v435_v45 = vld [vmem:[%s9621_s8 + $0x478] sm:$0xff]  ;;  %v9030_v52 = vpack.c.bf16 %v629_v40, %v433_v39 }
 0x176   : > { %v2460_v59 = vpop.f32.mrb[9].mxu1  ;;  %v9034_v54 = vpack.c.bf16 %v631_v46, %v435_v45  ;;  %v434_v58 = vld [vmem:[%s9621_s8 + $0x470] sm:$0xff]  ;;  %v639_v31 = vld [vmem:[%s9621_s8 + $0xad8] sm:$0x3] }
 0x177   : > { %v2459_v1 = vadd.f32 %v2458_v53, %v2389_v57  ;;  %v1327_v53 = vcombine.high %v1325_v41, %v1325_v41  ;;  %v628_v57 = vld [vmem:[%s9621_s8 + $0xa80] sm:$0x3]  ;;  %v630_v59 = vld [vmem:[%s9621_s8 + $0xa90] sm:$0x3] }
 0x178   : > { %v9036_v9 = vpack.c.bf16 %v630_v59, %v434_v58 }
 0x179   : > { %6167 = vmatmul.mubr.f32.vlgmr.msra.gmra.mrb[62].mxu0 %v1267_v27  ;;  %v1309_v27 = vcombine.high %v1301_v11, %v1301_v11 }
 0x17a   : > { %6237 = vmatmul.mubr.f32.vlgmr.msra.gmra.mrb[62].mxu1 %v1274_v32  ;;  %9009 = vmatpush1.bf16.xpose.msra.mxu0 %v9008_v63  ;;  %v428_v32 = vld [vmem:[%s9621_s8 + $0x440] sm:$0xff]  ;;  %v437_v63 = vld [vmem:[%s9621_s8 + $0x488] sm:$0xff] }
 0x17b   : > { %9013 = vmatpush1.bf16.xpose.msra.mxu1 %v9012_v0  ;;  %6306 = vmatprep.mubr.f32.mxu0 %v1292_v2  ;;  %v9024_v48 = vpack.c.bf16 %v624_v33, %v428_v32  ;;  %v633_v0 = vld [vmem:[%s9621_s8 + $0xaa8] sm:$0x3]  ;;  %v280_v32 = vld [vmem:[%s9614_s10 + $0x128] sm:$0xff] }
 0x17c   : > { %9015 = vmatprep.subr.bf16.mxu0 %v9014_v3  ;;  %v2528_v12 = vpop.f32.mrb[10].mxu0  ;;  %6376 = vmatprep.mubr.f32.mxu1 %v1293_v4  ;;  %v1362_v40 = vcombine.high %v280_v32, %v280_v32  ;;  %v1369_v45 = vrot.slane %v280_v32, %v9646_v25 }
 0x17d   : > { %v2598_v13 = vpop.f32.mrb[10].mxu1  ;;  %9019 = vmatprep.subr.bf16.mxu1 %v9018_v5  ;;  %v2529_v17 = vadd.f32 %v2528_v12, %v2459_v1  ;;  %v2530_v18 = vpop.f32.mrb[11].mxu0  ;;  %v1342_v1 = vrot.slane %v1328_v55, %v9646_v25  ;;  %v439_v5 = vld [vmem:[%s9621_s8 + $0x498] sm:$0xff]  ;;  %v9038_v12 = vpack.c.bf16 %v633_v0, %v437_v63 }
 0x17e   : > { %v2600_v19 = vpop.f32.mrb[11].mxu1  ;;  %v9042_v14 = vpack.c.bf16 %v635_v6, %v439_v5  ;;  %v438_v18 = vld [vmem:[%s9621_s8 + $0x490] sm:$0xff]  ;;  %v643_v55 = vld [vmem:[%s9621_s8 + $0xaf8] sm:$0x3] }
 0x17f   : > { %v2599_v26 = vadd.f32 %v2598_v13, %v2529_v17  ;;  %v1344_v13 = vcombine.high %v1342_v1, %v1342_v1  ;;  %v632_v17 = vld [vmem:[%s9621_s8 + $0xaa0] sm:$0x3]  ;;  %v634_v19 = vld [vmem:[%s9621_s8 + $0xab0] sm:$0x3] }
 0x180   : > { %v9044_v34 = vpack.c.bf16 %v634_v19, %v438_v18 }
 0x181   : > { %6307 = vmatmul.mubr.f32.vlgmr.msra.gmra.mrb[64].mxu0 %v1284_v51  ;;  %v1326_v51 = vcombine.high %v1318_v36, %v1318_v36 }
 0x182   : > { %6377 = vmatmul.mubr.f32.vlgmr.msra.gmra.mrb[64].mxu1 %v1291_v56  ;;  %9017 = vmatpush1.bf16.xpose.msra.mxu0 %v9016_v23  ;;  %v432_v56 = vld [vmem:[%s9621_s8 + $0x460] sm:$0xff]  ;;  %v441_v23 = vld [vmem:[%s9621_s8 + $0x4a8] sm:$0xff] }
 0x183   : > { %9021 = vmatpush1.bf16.xpose.msra.mxu1 %v9020_v24  ;;  %6446 = vmatprep.mubr.f32.mxu0 %v1309_v27  ;;  %v9032_v8 = vpack.c.bf16 %v628_v57, %v432_v56  ;;  %v637_v24 = vld [vmem:[%s9621_s8 + $0xac8] sm:$0x3] }
 0x184   : > { %9023 = vmatprep.subr.bf16.mxu0 %v9022_v28  ;;  %v2668_v37 = vpop.f32.mrb[12].mxu0  ;;  %6516 = vmatprep.mubr.f32.mxu1 %v1310_v29  ;;  %v281_v56 = vld [vmem:[%s9614_s10 + $0x130] sm:$0xff] }
 0x185   : > { %v2738_v38 = vpop.f32.mrb[12].mxu1  ;;  %9027 = vmatprep.subr.bf16.mxu1 %v9026_v30  ;;  %v2669_v42 = vadd.f32 %v2668_v37, %v2599_v26  ;;  %v2670_v43 = vpop.f32.mrb[13].mxu0  ;;  %v1359_v26 = vrot.slane %v1345_v15, %v9646_v25  ;;  %v443_v30 = vld [vmem:[%s9621_s8 + $0x4b8] sm:$0xff]  ;;  %v9046_v37 = vpack.c.bf16 %v637_v24, %v441_v23  ;;  %v1379_v0 = vcombine.high %v281_v56, %v281_v56 }
 0x186   : > { %v2740_v44 = vpop.f32.mrb[13].mxu1  ;;  %v9050_v39 = vpack.c.bf16 %v639_v31, %v443_v30  ;;  %v442_v43 = vld [vmem:[%s9621_s8 + $0x4b0] sm:$0xff]  ;;  %v1386_v5 = vrot.slane %v281_v56, %v9646_v25  ;;  %v647_v15 = vld [vmem:[%s9621_s8 + $0xb18] sm:$0x3] }
 0x187   : > { %v2739_v50 = vadd.f32 %v2738_v38, %v2669_v42  ;;  %v1361_v38 = vcombine.high %v1359_v26, %v1359_v26  ;;  %v636_v42 = vld [vmem:[%s9621_s8 + $0xac0] sm:$0x3]  ;;  %v638_v44 = vld [vmem:[%s9621_s8 + $0xad0] sm:$0x3] }
 0x188   : > { %v9052_v58 = vpack.c.bf16 %v638_v44, %v442_v43 }
 0x189   : > { %6447 = vmatmul.mubr.f32.vlgmr.msra.gmra.mrb[66].mxu0 %v1301_v11  ;;  %v1343_v11 = vcombine.high %v1335_v60, %v1335_v60 }
 0x18a   : > { %6517 = vmatmul.mubr.f32.vlgmr.msra.gmra.mrb[66].mxu1 %v1308_v16  ;;  %9025 = vmatpush1.bf16.xpose.msra.mxu0 %v9024_v48  ;;  %v436_v16 = vld [vmem:[%s9621_s8 + $0x480] sm:$0xff]  ;;  %v445_v48 = vld [vmem:[%s9621_s8 + $0x4c8] sm:$0xff] }
 0x18b   : > { %9029 = vmatpush1.bf16.xpose.msra.mxu1 %v9028_v49  ;;  %6586 = vmatprep.mubr.f32.mxu0 %v1326_v51  ;;  %v9040_v33 = vpack.c.bf16 %v632_v17, %v436_v16  ;;  %v641_v49 = vld [vmem:[%s9621_s8 + $0xae8] sm:$0x3] }
 0x18c   : > { %9031 = vmatprep.subr.bf16.mxu0 %v9030_v52  ;;  %v2808_v61 = vpop.f32.mrb[14].mxu0  ;;  %6656 = vmatprep.mubr.f32.mxu1 %v1327_v53  ;;  %v282_v16 = vld [vmem:[%s9614_s10 + $0x138] sm:$0xff] }
 0x18d   : > { %v2878_v62 = vpop.f32.mrb[14].mxu1  ;;  %9035 = vmatprep.subr.bf16.mxu1 %v9034_v54  ;;  %v2809_v2 = vadd.f32 %v2808_v61, %v2739_v50  ;;  %v2810_v3 = vpop.f32.mrb[15].mxu0  ;;  %v1376_v50 = vrot.slane %v1362_v40, %v9646_v25  ;;  %v447_v54 = vld [vmem:[%s9621_s8 + $0x4d8] sm:$0xff]  ;;  %v9054_v61 = vpack.c.bf16 %v641_v49, %v445_v48  ;;  %v1396_v24 = vcombine.high %v282_v16, %v282_v16 }
 0x18e   : > { %v2880_v4 = vpop.f32.mrb[15].mxu1  ;;  %v9058_v63 = vpack.c.bf16 %v643_v55, %v447_v54  ;;  %v446_v3 = vld [vmem:[%s9621_s8 + $0x4d0] sm:$0xff]  ;;  %v1403_v30 = vrot.slane %v282_v16, %v9646_v25  ;;  %v651_v40 = vld [vmem:[%s9621_s8 + $0xb38] sm:$0x3] }
 0x18f   : > { %v2879_v10 = vadd.f32 %v2878_v62, %v2809_v2  ;;  %v1378_v62 = vcombine.high %v1376_v50, %v1376_v50  ;;  %v640_v2 = vld [vmem:[%s9621_s8 + $0xae0] sm:$0x3]  ;;  %v642_v4 = vld [vmem:[%s9621_s8 + $0xaf0] sm:$0x3] }
 0x190   : > { %v9060_v18 = vpack.c.bf16 %v642_v4, %v446_v3 }
 0x191   : > { %6587 = vmatmul.mubr.f32.vlgmr.msra.gmra.mrb[68].mxu0 %v1318_v36  ;;  %v1360_v36 = vcombine.high %v1352_v20, %v1352_v20 }
 0x192   : > { %6657 = vmatmul.mubr.f32.vlgmr.msra.gmra.mrb[68].mxu1 %v1325_v41  ;;  %9033 = vmatpush1.bf16.xpose.msra.mxu0 %v9032_v8  ;;  %v440_v41 = vld [vmem:[%s9621_s8 + $0x4a0] sm:$0xff]  ;;  %v449_v8 = vld [vmem:[%s9621_s8 + $0x4e8] sm:$0xff] }
 0x193   : > { %9037 = vmatpush1.bf16.xpose.msra.mxu1 %v9036_v9  ;;  %6726 = vmatprep.mubr.f32.mxu0 %v1343_v11  ;;  %v9048_v57 = vpack.c.bf16 %v636_v42, %v440_v41  ;;  %v645_v9 = vld [vmem:[%s9621_s8 + $0xb08] sm:$0x3]  ;;  %v283_v41 = vld [vmem:[%s9614_s10 + $0x140] sm:$0xff] }
 0x194   : > { %9039 = vmatprep.subr.bf16.mxu0 %v9038_v12  ;;  %v2948_v21 = vpop.f32.mrb[16].mxu0  ;;  %6796 = vmatprep.mubr.f32.mxu1 %v1344_v13  ;;  %v1413_v49 = vcombine.high %v283_v41, %v283_v41  ;;  %v1420_v54 = vrot.slane %v283_v41, %v9646_v25 }
 0x195   : > { %v3018_v22 = vpop.f32.mrb[16].mxu1  ;;  %9043 = vmatprep.subr.bf16.mxu1 %v9042_v14  ;;  %v2949_v27 = vadd.f32 %v2948_v21, %v2879_v10  ;;  %v2950_v28 = vpop.f32.mrb[17].mxu0  ;;  %v1393_v10 = vrot.slane %v1379_v0, %v9646_v25  ;;  %v451_v14 = vld [vmem:[%s9621_s8 + $0x4f8] sm:$0xff]  ;;  %v9062_v21 = vpack.c.bf16 %v645_v9, %v449_v8 }
 0x196   : > { %v3020_v29 = vpop.f32.mrb[17].mxu1  ;;  %v9066_v23 = vpack.c.bf16 %v647_v15, %v451_v14  ;;  %v450_v28 = vld [vmem:[%s9621_s8 + $0x4f0] sm:$0xff]  ;;  %v655_v0 = vld [vmem:[%s9621_s8 + $0xb58] sm:$0x3] }
 0x197   : > { %v3019_v35 = vadd.f32 %v3018_v22, %v2949_v27  ;;  %v1395_v22 = vcombine.high %v1393_v10, %v1393_v10  ;;  %v644_v27 = vld [vmem:[%s9621_s8 + $0xb00] sm:$0x3]  ;;  %v646_v29 = vld [vmem:[%s9621_s8 + $0xb10] sm:$0x3] }
 0x198   : > { %v9068_v43 = vpack.c.bf16 %v646_v29, %v450_v28 }
 0x199   : > { %6727 = vmatmul.mubr.f32.vlgmr.msra.gmra.mrb[70].mxu0 %v1335_v60  ;;  %v1377_v60 = vcombine.high %v1369_v45, %v1369_v45 }
 0x19a   : > { %6797 = vmatmul.mubr.f32.vlgmr.msra.gmra.mrb[70].mxu1 %v1342_v1  ;;  %9041 = vmatpush1.bf16.xpose.msra.mxu0 %v9040_v33  ;;  %v444_v1 = vld [vmem:[%s9621_s8 + $0x4c0] sm:$0xff]  ;;  %v453_v33 = vld [vmem:[%s9621_s8 + $0x508] sm:$0xff] }
 0x19b   : > { %9045 = vmatpush1.bf16.xpose.msra.mxu1 %v9044_v34  ;;  %6866 = vmatprep.mubr.f32.mxu0 %v1360_v36  ;;  %v9056_v17 = vpack.c.bf16 %v640_v2, %v444_v1  ;;  %v649_v34 = vld [vmem:[%s9621_s8 + $0xb28] sm:$0x3]  ;;  %v284_v1 = vld [vmem:[%s9614_s10 + $0x148] sm:$0xff] }
 0x19c   : > { %9047 = vmatprep.subr.bf16.mxu0 %v9046_v37  ;;  %v3088_v46 = vpop.f32.mrb[18].mxu0  ;;  %6936 = vmatprep.mubr.f32.mxu1 %v1361_v38  ;;  %v1430_v9 = vcombine.high %v284_v1, %v284_v1  ;;  %v1437_v14 = vrot.slane %v284_v1, %v9646_v25 }
 0x19d   : > { %v3158_v47 = vpop.f32.mrb[18].mxu1  ;;  %9051 = vmatprep.subr.bf16.mxu1 %v9050_v39  ;;  %v3089_v51 = vadd.f32 %v3088_v46, %v3019_v35  ;;  %v3090_v52 = vpop.f32.mrb[19].mxu0  ;;  %v1410_v35 = vrot.slane %v1396_v24, %v9646_v25  ;;  %v455_v39 = vld [vmem:[%s9621_s8 + $0x518] sm:$0xff]  ;;  %v9070_v46 = vpack.c.bf16 %v649_v34, %v453_v33 }
 0x19e   : > { %v3160_v53 = vpop.f32.mrb[19].mxu1  ;;  %v9074_v48 = vpack.c.bf16 %v651_v40, %v455_v39  ;;  %v454_v52 = vld [vmem:[%s9621_s8 + $0x510] sm:$0xff]  ;;  %v659_v24 = vld [vmem:[%s9621_s8 + $0xb78] sm:$0x3] }
 0x19f   : > { %v3159_v59 = vadd.f32 %v3158_v47, %v3089_v51  ;;  %v1412_v47 = vcombine.high %v1410_v35, %v1410_v35  ;;  %v648_v51 = vld [vmem:[%s9621_s8 + $0xb20] sm:$0x3]  ;;  %v650_v53 = vld [vmem:[%s9621_s8 + $0xb30] sm:$0x3] }
 0x1a0   : > { %v9076_v3 = vpack.c.bf16 %v650_v53, %v454_v52 }
 0x1a1   : > { %6867 = vmatmul.mubr.f32.vlgmr.msra.gmra.mrb[72].mxu0 %v1352_v20  ;;  %v1394_v20 = vcombine.high %v1386_v5, %v1386_v5 }
 0x1a2   : > { %6937 = vmatmul.mubr.f32.vlgmr.msra.gmra.mrb[72].mxu1 %v1359_v26  ;;  %9049 = vmatpush1.bf16.xpose.msra.mxu0 %v9048_v57  ;;  %v448_v26 = vld [vmem:[%s9621_s8 + $0x4e0] sm:$0xff]  ;;  %v457_v57 = vld [vmem:[%s9621_s8 + $0x528] sm:$0xff] }
 0x1a3   : > { %9053 = vmatpush1.bf16.xpose.msra.mxu1 %v9052_v58  ;;  %7006 = vmatprep.mubr.f32.mxu0 %v1377_v60  ;;  %v9064_v42 = vpack.c.bf16 %v644_v27, %v448_v26  ;;  %v653_v58 = vld [vmem:[%s9621_s8 + $0xb48] sm:$0x3] }
 0x1a4   : > { %9055 = vmatprep.subr.bf16.mxu0 %v9054_v61  ;;  %v3228_v6 = vpop.f32.mrb[20].mxu0  ;;  %7076 = vmatprep.mubr.f32.mxu1 %v1378_v62  ;;  %v285_v26 = vld [vmem:[%s9614_s10 + $0x150] sm:$0xff] }
 0x1a5   : > { %v3298_v7 = vpop.f32.mrb[20].mxu1  ;;  %9059 = vmatprep.subr.bf16.mxu1 %v9058_v63  ;;  %v3229_v11 = vadd.f32 %v3228_v6, %v3159_v59  ;;  %v3230_v12 = vpop.f32.mrb[21].mxu0  ;;  %v1427_v59 = vrot.slane %v1413_v49, %v9646_v25  ;;  %v459_v63 = vld [vmem:[%s9621_s8 + $0x538] sm:$0xff]  ;;  %v9078_v6 = vpack.c.bf16 %v653_v58, %v457_v57  ;;  %v1447_v34 = vcombine.high %v285_v26, %v285_v26 }
 0x1a6   : > { %v3300_v13 = vpop.f32.mrb[21].mxu1  ;;  %v9082_v8 = vpack.c.bf16 %v655_v0, %v459_v63  ;;  %v458_v12 = vld [vmem:[%s9621_s8 + $0x530] sm:$0xff]  ;;  %v1454_v39 = vrot.slane %v285_v26, %v9646_v25  ;;  %v663_v49 = vld [vmem:[%s9621_s8 + $0xb98] sm:$0x3] }
 0x1a7   : > { %v3299_v19 = vadd.f32 %v3298_v7, %v3229_v11  ;;  %v1429_v7 = vcombine.high %v1427_v59, %v1427_v59  ;;  %v652_v11 = vld [vmem:[%s9621_s8 + $0xb40] sm:$0x3]  ;;  %v654_v13 = vld [vmem:[%s9621_s8 + $0xb50] sm:$0x3] }
 0x1a8   : > { %v9084_v28 = vpack.c.bf16 %v654_v13, %v458_v12 }
 0x1a9   : > { %7007 = vmatmul.mubr.f32.vlgmr.msra.gmra.mrb[74].mxu0 %v1369_v45  ;;  %v1411_v45 = vcombine.high %v1403_v30, %v1403_v30 }
 0x1aa   : > { %7077 = vmatmul.mubr.f32.vlgmr.msra.gmra.mrb[74].mxu1 %v1376_v50  ;;  %9057 = vmatpush1.bf16.xpose.msra.mxu0 %v9056_v17  ;;  %v452_v50 = vld [vmem:[%s9621_s8 + $0x500] sm:$0xff]  ;;  %v461_v17 = vld [vmem:[%s9621_s8 + $0x548] sm:$0xff] }
 0x1ab   : > { %9061 = vmatpush1.bf16.xpose.msra.mxu1 %v9060_v18  ;;  %7146 = vmatprep.mubr.f32.mxu0 %v1394_v20  ;;  %v9072_v2 = vpack.c.bf16 %v648_v51, %v452_v50  ;;  %v657_v18 = vld [vmem:[%s9621_s8 + $0xb68] sm:$0x3] }
 0x1ac   : > { %9063 = vmatprep.subr.bf16.mxu0 %v9062_v21  ;;  %v3368_v31 = vpop.f32.mrb[22].mxu0  ;;  %7216 = vmatprep.mubr.f32.mxu1 %v1395_v22  ;;  %v286_v50 = vld [vmem:[%s9614_s10 + $0x158] sm:$0xff] }
 0x1ad   : > { %v3438_v32 = vpop.f32.mrb[22].mxu1  ;;  %9067 = vmatprep.subr.bf16.mxu1 %v9066_v23  ;;  %v3369_v36 = vadd.f32 %v3368_v31, %v3299_v19  ;;  %v3370_v37 = vpop.f32.mrb[23].mxu0  ;;  %v1444_v19 = vrot.slane %v1430_v9, %v9646_v25  ;;  %v463_v23 = vld [vmem:[%s9621_s8 + $0x558] sm:$0xff]  ;;  %v9086_v31 = vpack.c.bf16 %v657_v18, %v461_v17  ;;  %v1464_v58 = vcombine.high %v286_v50, %v286_v50 }
 0x1ae   : > { %v3440_v38 = vpop.f32.mrb[23].mxu1  ;;  %v9090_v33 = vpack.c.bf16 %v659_v24, %v463_v23  ;;  %v462_v37 = vld [vmem:[%s9621_s8 + $0x550] sm:$0xff]  ;;  %v1471_v63 = vrot.slane %v286_v50, %v9646_v25  ;;  %v667_v9 = vld [vmem:[%s9621_s8 + $0xbb8] sm:$0x3] }
 0x1af   : > { %v3439_v44 = vadd.f32 %v3438_v32, %v3369_v36  ;;  %v1446_v32 = vcombine.high %v1444_v19, %v1444_v19  ;;  %v656_v36 = vld [vmem:[%s9621_s8 + $0xb60] sm:$0x3]  ;;  %v658_v38 = vld [vmem:[%s9621_s8 + $0xb70] sm:$0x3] }
 0x1b0   : > { %v9092_v52 = vpack.c.bf16 %v658_v38, %v462_v37 }
 0x1b1   : > { %7147 = vmatmul.mubr.f32.vlgmr.msra.gmra.mrb[76].mxu0 %v1386_v5  ;;  %v1428_v5 = vcombine.high %v1420_v54, %v1420_v54 }
 0x1b2   : > { %7217 = vmatmul.mubr.f32.vlgmr.msra.gmra.mrb[76].mxu1 %v1393_v10  ;;  %9065 = vmatpush1.bf16.xpose.msra.mxu0 %v9064_v42  ;;  %v456_v10 = vld [vmem:[%s9621_s8 + $0x520] sm:$0xff]  ;;  %v465_v42 = vld [vmem:[%s9621_s8 + $0x568] sm:$0xff] }
 0x1b3   : > { %9069 = vmatpush1.bf16.xpose.msra.mxu1 %v9068_v43  ;;  %7286 = vmatprep.mubr.f32.mxu0 %v1411_v45  ;;  %v9080_v27 = vpack.c.bf16 %v652_v11, %v456_v10  ;;  %v661_v43 = vld [vmem:[%s9621_s8 + $0xb88] sm:$0x3]  ;;  %v287_v10 = vld [vmem:[%s9614_s10 + $0x160] sm:$0xff] }
 0x1b4   : > { %9071 = vmatprep.subr.bf16.mxu0 %v9070_v46  ;;  %v3508_v55 = vpop.f32.mrb[24].mxu0  ;;  %7356 = vmatprep.mubr.f32.mxu1 %v1412_v47  ;;  %v1481_v18 = vcombine.high %v287_v10, %v287_v10  ;;  %v1488_v23 = vrot.slane %v287_v10, %v9646_v25 }
 0x1b5   : > { %v3578_v56 = vpop.f32.mrb[24].mxu1  ;;  %9075 = vmatprep.subr.bf16.mxu1 %v9074_v48  ;;  %v3509_v60 = vadd.f32 %v3508_v55, %v3439_v44  ;;  %v3510_v61 = vpop.f32.mrb[25].mxu0  ;;  %v1461_v44 = vrot.slane %v1447_v34, %v9646_v25  ;;  %v467_v48 = vld [vmem:[%s9621_s8 + $0x578] sm:$0xff]  ;;  %v9094_v55 = vpack.c.bf16 %v661_v43, %v465_v42 }
 0x1b6   : > { %v3580_v62 = vpop.f32.mrb[25].mxu1  ;;  %v9098_v57 = vpack.c.bf16 %v663_v49, %v467_v48  ;;  %v466_v61 = vld [vmem:[%s9621_s8 + $0x570] sm:$0xff]  ;;  %v671_v34 = vld [vmem:[%s9621_s8 + $0xbd8] sm:$0x3] }
 0x1b7   : > { %v3579_v4 = vadd.f32 %v3578_v56, %v3509_v60  ;;  %v1463_v56 = vcombine.high %v1461_v44, %v1461_v44  ;;  %v660_v60 = vld [vmem:[%s9621_s8 + $0xb80] sm:$0x3]  ;;  %v662_v62 = vld [vmem:[%s9621_s8 + $0xb90] sm:$0x3] }
 0x1b8   : > { %v9100_v12 = vpack.c.bf16 %v662_v62, %v466_v61 }
 0x1b9   : > { %7287 = vmatmul.mubr.f32.vlgmr.msra.gmra.mrb[78].mxu0 %v1403_v30  ;;  %v1445_v30 = vcombine.high %v1437_v14, %v1437_v14 }
 0x1ba   : > { %7357 = vmatmul.mubr.f32.vlgmr.msra.gmra.mrb[78].mxu1 %v1410_v35  ;;  %9073 = vmatpush1.bf16.xpose.msra.mxu0 %v9072_v2  ;;  %v460_v35 = vld [vmem:[%s9621_s8 + $0x540] sm:$0xff]  ;;  %v469_v2 = vld [vmem:[%s9621_s8 + $0x588] sm:$0xff] }
 0x1bb   : > { %9077 = vmatpush1.bf16.xpose.msra.mxu1 %v9076_v3  ;;  %7426 = vmatprep.mubr.f32.mxu0 %v1428_v5  ;;  %v9088_v51 = vpack.c.bf16 %v656_v36, %v460_v35  ;;  %v665_v3 = vld [vmem:[%s9621_s8 + $0xba8] sm:$0x3]  ;;  %v288_v35 = vld [vmem:[%s9614_s10 + $0x168] sm:$0xff] }
 0x1bc   : > { %9079 = vmatprep.subr.bf16.mxu0 %v9078_v6  ;;  %v3648_v15 = vpop.f32.mrb[26].mxu0  ;;  %7496 = vmatprep.mubr.f32.mxu1 %v1429_v7  ;;  %v1498_v43 = vcombine.high %v288_v35, %v288_v35  ;;  %v1505_v48 = vrot.slane %v288_v35, %v9646_v25 }
 0x1bd   : > { %v3718_v16 = vpop.f32.mrb[26].mxu1  ;;  %9083 = vmatprep.subr.bf16.mxu1 %v9082_v8  ;;  %v3649_v20 = vadd.f32 %v3648_v15, %v3579_v4  ;;  %v3650_v21 = vpop.f32.mrb[27].mxu0  ;;  %v1478_v4 = vrot.slane %v1464_v58, %v9646_v25  ;;  %v471_v8 = vld [vmem:[%s9621_s8 + $0x598] sm:$0xff]  ;;  %v9102_v15 = vpack.c.bf16 %v665_v3, %v469_v2 }
 0x1be   : > { %v3720_v22 = vpop.f32.mrb[27].mxu1  ;;  %v9106_v17 = vpack.c.bf16 %v667_v9, %v471_v8  ;;  %v470_v21 = vld [vmem:[%s9621_s8 + $0x590] sm:$0xff]  ;;  %v675_v58 = vld [vmem:[%s9621_s8 + $0xbf8] sm:$0x3] }
 0x1bf   : > { %v3719_v29 = vadd.f32 %v3718_v16, %v3649_v20  ;;  %v1480_v16 = vcombine.high %v1478_v4, %v1478_v4  ;;  %v664_v20 = vld [vmem:[%s9621_s8 + $0xba0] sm:$0x3]  ;;  %v666_v22 = vld [vmem:[%s9621_s8 + $0xbb0] sm:$0x3] }
 0x1c0   : > { %v9108_v37 = vpack.c.bf16 %v666_v22, %v470_v21 }
 0x1c1   : > { %7427 = vmatmul.mubr.f32.vlgmr.msra.gmra.mrb[80].mxu0 %v1420_v54  ;;  %v1462_v54 = vcombine.high %v1454_v39, %v1454_v39 }
 0x1c2   : > { %7497 = vmatmul.mubr.f32.vlgmr.msra.gmra.mrb[80].mxu1 %v1427_v59  ;;  %9081 = vmatpush1.bf16.xpose.msra.mxu0 %v9080_v27  ;;  %v464_v59 = vld [vmem:[%s9621_s8 + $0x560] sm:$0xff]  ;;  %v473_v27 = vld [vmem:[%s9621_s8 + $0x5a8] sm:$0xff] }
 0x1c3   : > { %9085 = vmatpush1.bf16.xpose.msra.mxu1 %v9084_v28  ;;  %7566 = vmatprep.mubr.f32.mxu0 %v1445_v30  ;;  %v9096_v11 = vpack.c.bf16 %v660_v60, %v464_v59  ;;  %v669_v28 = vld [vmem:[%s9621_s8 + $0xbc8] sm:$0x3] }
 0x1c4   : > { %9087 = vmatprep.subr.bf16.mxu0 %v9086_v31  ;;  %v3788_v40 = vpop.f32.mrb[28].mxu0  ;;  %7636 = vmatprep.mubr.f32.mxu1 %v1446_v32  ;;  %v289_v59 = vld [vmem:[%s9614_s10 + $0x170] sm:$0xff] }
 0x1c5   : > { %v3858_v41 = vpop.f32.mrb[28].mxu1  ;;  %9091 = vmatprep.subr.bf16.mxu1 %v9090_v33  ;;  %v3789_v45 = vadd.f32 %v3788_v40, %v3719_v29  ;;  %v3790_v46 = vpop.f32.mrb[29].mxu0  ;;  %v1495_v29 = vrot.slane %v1481_v18, %v9646_v25  ;;  %v475_v33 = vld [vmem:[%s9621_s8 + $0x5b8] sm:$0xff]  ;;  %v9110_v40 = vpack.c.bf16 %v669_v28, %v473_v27  ;;  %v1515_v3 = vcombine.high %v289_v59, %v289_v59 }
 0x1c6   : > { %v3860_v47 = vpop.f32.mrb[29].mxu1  ;;  %v9114_v42 = vpack.c.bf16 %v671_v34, %v475_v33  ;;  %v474_v46 = vld [vmem:[%s9621_s8 + $0x5b0] sm:$0xff]  ;;  %v1522_v8 = vrot.slane %v289_v59, %v9646_v25  ;;  %v679_v18 = vld [vmem:[%s9621_s8 + $0xc18] sm:$0x3] }
 0x1c7   : > { %v3859_v53 = vadd.f32 %v3858_v41, %v3789_v45  ;;  %v1497_v41 = vcombine.high %v1495_v29, %v1495_v29  ;;  %v668_v45 = vld [vmem:[%s9621_s8 + $0xbc0] sm:$0x3]  ;;  %v670_v47 = vld [vmem:[%s9621_s8 + $0xbd0] sm:$0x3] }
 0x1c8   : > { %v9116_v61 = vpack.c.bf16 %v670_v47, %v474_v46 }
 0x1c9   : > { %7567 = vmatmul.mubr.f32.vlgmr.msra.gmra.mrb[82].mxu0 %v1437_v14  ;;  %v1479_v14 = vcombine.high %v1471_v63, %v1471_v63 }
 0x1ca   : > { %7637 = vmatmul.mubr.f32.vlgmr.msra.gmra.mrb[82].mxu1 %v1444_v19  ;;  %9089 = vmatpush1.bf16.xpose.msra.mxu0 %v9088_v51  ;;  %v468_v19 = vld [vmem:[%s9621_s8 + $0x580] sm:$0xff]  ;;  %v477_v51 = vld [vmem:[%s9621_s8 + $0x5c8] sm:$0xff] }
 0x1cb   : > { %9093 = vmatpush1.bf16.xpose.msra.mxu1 %v9092_v52  ;;  %7706 = vmatprep.mubr.f32.mxu0 %v1462_v54  ;;  %v9104_v36 = vpack.c.bf16 %v664_v20, %v468_v19  ;;  %v673_v52 = vld [vmem:[%s9621_s8 + $0xbe8] sm:$0x3] }
 0x1cc   : > { %9095 = vmatprep.subr.bf16.mxu0 %v9094_v55  ;;  %v3928_v0 = vpop.f32.mrb[30].mxu0  ;;  %7776 = vmatprep.mubr.f32.mxu1 %v1463_v56  ;;  %v290_v19 = vld [vmem:[%s9614_s10 + $0x178] sm:$0xff] }
 0x1cd   : > { %v3998_v1 = vpop.f32.mrb[30].mxu1  ;;  %9099 = vmatprep.subr.bf16.mxu1 %v9098_v57  ;;  %v3929_v5 = vadd.f32 %v3928_v0, %v3859_v53  ;;  %v3930_v6 = vpop.f32.mrb[31].mxu0  ;;  %v1512_v53 = vrot.slane %v1498_v43, %v9646_v25  ;;  %v479_v57 = vld [vmem:[%s9621_s8 + $0x5d8] sm:$0xff]  ;;  %v9118_v0 = vpack.c.bf16 %v673_v52, %v477_v51  ;;  %v1532_v28 = vcombine.high %v290_v19, %v290_v19 }
 0x1ce   : > { %v4000_v7 = vpop.f32.mrb[31].mxu1  ;;  %v9122_v2 = vpack.c.bf16 %v675_v58, %v479_v57  ;;  %v478_v6 = vld [vmem:[%s9621_s8 + $0x5d0] sm:$0xff]  ;;  %v1539_v33 = vrot.slane %v290_v19, %v9646_v25  ;;  %v487_v43 = vld [vmem:[%s9621_s8 + $0x618] sm:$0xff] }
 0x1cf   : > { %v3999_v13 = vadd.f32 %v3998_v1, %v3929_v5  ;;  %v1514_v1 = vcombine.high %v1512_v53, %v1512_v53  ;;  %v672_v5 = vld [vmem:[%s9621_s8 + $0xbe0] sm:$0x3]  ;;  %v674_v7 = vld [vmem:[%s9621_s8 + $0xbf0] sm:$0x3] }
 0x1d0   : > { %v9124_v21 = vpack.c.bf16 %v674_v7, %v478_v6 }
 0x1d1   : > { %7707 = vmatmul.mubr.f32.vlgmr.msra.gmra.mrb[84].mxu0 %v1454_v39  ;;  %v1496_v39 = vcombine.high %v1488_v23, %v1488_v23 }
 0x1d2   : > { %7777 = vmatmul.mubr.f32.vlgmr.msra.gmra.mrb[84].mxu1 %v1461_v44  ;;  %9097 = vmatpush1.bf16.xpose.msra.mxu0 %v9096_v11  ;;  %v472_v44 = vld [vmem:[%s9621_s8 + $0x5a0] sm:$0xff]  ;;  %v481_v11 = vld [vmem:[%s9621_s8 + $0x5e8] sm:$0xff] }
 0x1d3   : > { %9101 = vmatpush1.bf16.xpose.msra.mxu1 %v9100_v12  ;;  %7846 = vmatprep.mubr.f32.mxu0 %v1479_v14  ;;  %v9112_v60 = vpack.c.bf16 %v668_v45, %v472_v44  ;;  %v677_v12 = vld [vmem:[%s9621_s8 + $0xc08] sm:$0x3]  ;;  %v683_v44 = vld [vmem:[%s9621_s8 + $0xc38] sm:$0x3] }
 0x1d4   : > { %9103 = vmatprep.subr.bf16.mxu0 %v9102_v15  ;;  %v4068_v24 = vpop.f32.mrb[32].mxu0  ;;  %7916 = vmatprep.mubr.f32.mxu1 %v1480_v16  ;;  %v9138_v52 = vpack.c.bf16 %v683_v44, %v487_v43 }
 0x1d5   : > { %v4138_v26 = vpop.f32.mrb[32].mxu1  ;;  %9107 = vmatprep.subr.bf16.mxu1 %v9106_v17  ;;  %v4069_v30 = vadd.f32 %v4068_v24, %v3999_v13  ;;  %v4070_v31 = vpop.f32.mrb[33].mxu0  ;;  %v1529_v13 = vrot.slane %v1515_v3, %v9646_v25  ;;  %v483_v17 = vld [vmem:[%s9621_s8 + $0x5f8] sm:$0xff]  ;;  %v9126_v24 = vpack.c.bf16 %v677_v12, %v481_v11 }
 0x1d6   : > { %v4140_v32 = vpop.f32.mrb[33].mxu1  ;;  %v9130_v27 = vpack.c.bf16 %v679_v18, %v483_v17  ;;  %v482_v31 = vld [vmem:[%s9621_s8 + $0x5f0] sm:$0xff] }
 0x1d7   : > { %v4139_v38 = vadd.f32 %v4138_v26, %v4069_v30  ;;  %v1531_v26 = vcombine.high %v1529_v13, %v1529_v13  ;;  %v676_v30 = vld [vmem:[%s9621_s8 + $0xc00] sm:$0x3]  ;;  %v678_v32 = vld [vmem:[%s9621_s8 + $0xc10] sm:$0x3] }
 0x1d8   : > { %v9132_v46 = vpack.c.bf16 %v678_v32, %v482_v31 }
 0x1d9   : > { %7847 = vmatmul.mubr.f32.vlgmr.msra.gmra.mrb[86].mxu0 %v1471_v63  ;;  %v1513_v63 = vcombine.high %v1505_v48, %v1505_v48 }
 0x1da   : > { %7917 = vmatmul.mubr.f32.vlgmr.msra.gmra.mrb[86].mxu1 %v1478_v4  ;;  %9105 = vmatpush1.bf16.xpose.msra.mxu0 %v9104_v36  ;;  %v476_v4 = vld [vmem:[%s9621_s8 + $0x5c0] sm:$0xff]  ;;  %v485_v36 = vld [vmem:[%s9621_s8 + $0x608] sm:$0xff] }
 0x1db   : > { %9109 = vmatpush1.bf16.xpose.msra.mxu1 %v9108_v37  ;;  %7986 = vmatprep.mubr.f32.mxu0 %v1496_v39  ;;  %v9120_v20 = vpack.c.bf16 %v672_v5, %v476_v4  ;;  %v681_v37 = vld [vmem:[%s9621_s8 + $0xc28] sm:$0x3]  ;;  %v291_v39 = vld [vmem:[%s9614_s10 + $0x180] sm:$0xff] }
 0x1dc   : > { %9111 = vmatprep.subr.bf16.mxu0 %v9110_v40  ;;  %v4208_v49 = vpop.f32.mrb[34].mxu0  ;;  %8056 = vmatprep.mubr.f32.mxu1 %v1497_v41  ;;  %v1556_v57 = vrot.slane %v291_v39, %v9646_v25 }
 0x1dd   : > { %v4278_v50 = vpop.f32.mrb[34].mxu1  ;;  %9115 = vmatprep.subr.bf16.mxu1 %v9114_v42  ;;  %v4209_v54 = vadd.f32 %v4208_v49, %v4139_v38  ;;  %v4210_v55 = vpop.f32.mrb[35].mxu0  ;;  %v1546_v38 = vrot.slane %v1532_v28, %v9646_v25  ;;  %v9134_v49 = vpack.c.bf16 %v681_v37, %v485_v36 }
 0x1de   : > { %v4280_v56 = vpop.f32.mrb[35].mxu1  ;;  %v486_v55 = vld [vmem:[%s9621_s8 + $0x610] sm:$0xff]  ;;  %v1564_v3 = vcombine.high %v1556_v57, %v1556_v57 }
 0x1df   : > { %v4279_v62 = vadd.f32 %v4278_v50, %v4209_v54  ;;  %v1549_v50 = vcombine.high %v291_v39, %v291_v39  ;;  %v1548_v51 = vcombine.high %v1546_v38, %v1546_v38  ;;  %v680_v54 = vld [vmem:[%s9621_s8 + $0xc20] sm:$0x3]  ;;  %v682_v56 = vld [vmem:[%s9621_s8 + $0xc30] sm:$0x3] }
 0x1e1   : > { %7987 = vmatmul.mubr.f32.vlgmr.msra.gmra.mrb[88].mxu0 %v1488_v23  ;;  %v1530_v23 = vcombine.high %v1522_v8, %v1522_v8  ;;  %v1563_v58 = vrot.slane %v1549_v50, %v9646_v25 }
 0x1e2   : > { %8057 = vmatmul.mubr.f32.vlgmr.msra.gmra.mrb[88].mxu1 %v1495_v29  ;;  %9113 = vmatpush1.bf16.xpose.msra.mxu0 %v9112_v60  ;;  %v480_v29 = vld [vmem:[%s9621_s8 + $0x5e0] sm:$0xff] }
 0x1e3   : > { %9117 = vmatpush1.bf16.xpose.msra.mxu1 %v9116_v61  ;;  %8126 = vmatprep.mubr.f32.mxu0 %v1513_v63  ;;  %v9128_v45 = vpack.c.bf16 %v676_v30, %v480_v29  ;;  %v1565_v4 = vcombine.high %v1563_v58, %v1563_v58 }
 0x1e4   : > { %9119 = vmatprep.subr.bf16.mxu0 %v9118_v0  ;;  %v4348_v9 = vpop.f32.mrb[36].mxu0  ;;  %8196 = vmatprep.mubr.f32.mxu1 %v1514_v1  ;;  %v9140_v1 = vpack.c.bf16 %v682_v56, %v486_v55 }
 0x1e5   : > { %v4418_v10 = vpop.f32.mrb[36].mxu1  ;;  %9123 = vmatprep.subr.bf16.mxu1 %v9122_v2  ;;  %v4349_v14 = vadd.f32 %v4348_v9, %v4279_v62  ;;  %v4350_v15 = vpop.f32.mrb[37].mxu0 }
 0x1e6   : > { %v4420_v16 = vpop.f32.mrb[37].mxu1 }
 0x1e7   : > { %v4419_v22 = vadd.f32 %v4418_v10, %v4349_v14 }
 0x1e9   : > { %8127 = vmatmul.mubr.f32.vlgmr.msra.gmra.mrb[90].mxu0 %v1505_v48  ;;  %v1547_v48 = vcombine.high %v1539_v33, %v1539_v33 }
 0x1ea   : > { %8197 = vmatmul.mubr.f32.vlgmr.msra.gmra.mrb[90].mxu1 %v1512_v53  ;;  %9121 = vmatpush1.bf16.xpose.msra.mxu0 %v9120_v20  ;;  %v484_v53 = vld [vmem:[%s9621_s8 + $0x600] sm:$0xff] }
 0x1eb   : > { %9125 = vmatpush1.bf16.xpose.msra.mxu1 %v9124_v21  ;;  %8266 = vmatprep.mubr.f32.mxu0 %v1530_v23  ;;  %v9136_v0 = vpack.c.bf16 %v680_v54, %v484_v53 }
 0x1ec   : > { %9127 = vmatprep.subr.bf16.mxu0 %v9126_v24  ;;  %v4488_v34 = vpop.f32.mrb[38].mxu0  ;;  %8336 = vmatprep.mubr.f32.mxu1 %v1531_v26 }
 0x1ed   : > { %v4558_v35 = vpop.f32.mrb[38].mxu1  ;;  %9131 = vmatprep.subr.bf16.mxu1 %v9130_v27  ;;  %v4489_v40 = vadd.f32 %v4488_v34, %v4419_v22  ;;  %v4490_v41 = vpop.f32.mrb[39].mxu0 }
 0x1ee   : > { %v4560_v42 = vpop.f32.mrb[39].mxu1 }
 0x1ef   : > { %v4559_v47 = vadd.f32 %v4558_v35, %v4489_v40 }
 0x1f1   : > { %8267 = vmatmul.mubr.f32.vlgmr.msra.gmra.mrb[92].mxu0 %v1522_v8 }
 0x1f2   : > { %8337 = vmatmul.mubr.f32.vlgmr.msra.gmra.mrb[92].mxu1 %v1529_v13  ;;  %9129 = vmatpush1.bf16.xpose.msra.mxu0 %v9128_v45 }
 0x1f3   : > { %9133 = vmatpush1.bf16.xpose.msra.mxu1 %v9132_v46  ;;  %8406 = vmatprep.mubr.f32.mxu0 %v1547_v48 }
 0x1f4   : > { %9135 = vmatprep.subr.bf16.mxu0 %v9134_v49  ;;  %v4628_v59 = vpop.f32.mrb[40].mxu0  ;;  %8476 = vmatprep.mubr.f32.mxu1 %v1548_v51 }
 0x1f5   : > { %v4698_v60 = vpop.f32.mrb[40].mxu1  ;;  %9139 = vmatprep.subr.bf16.mxu1 %v9138_v52  ;;  %v4629_v61 = vadd.f32 %v4628_v59, %v4559_v47  ;;  %v4630_v62 = vpop.f32.mrb[41].mxu0 }
 0x1f6   : > { %v4700_v63 = vpop.f32.mrb[41].mxu1 }
 0x1f7   : > { %v4699_v2 = vadd.f32 %v4698_v60, %v4629_v61 }
 0x1f9   : > { %8407 = vmatmul.mubr.f32.vlgmr.msra.gmra.mrb[94].mxu0 %v1539_v33 }
 0x1fa   : > { %8477 = vmatmul.mubr.f32.vlgmr.msra.gmra.mrb[94].mxu1 %v1546_v38  ;;  %9137 = vmatpush1.bf16.xpose.msra.mxu0 %v9136_v0 }
 0x1fb   : > { %9141 = vmatpush1.bf16.xpose.msra.mxu1 %v9140_v1  ;;  %8546 = vmatprep.mubr.f32.mxu0 %v1564_v3 }
 0x1fc   : > { %8616 = vmatprep.mubr.f32.mxu1 %v1565_v4  ;;  %v4768_v5 = vpop.f32.mrb[42].mxu0 }
 0x1fd   : > { %v4838_v25 = vpop.f32.mrb[42].mxu1  ;;  %v4769_v6 = vadd.f32 %v4768_v5, %v4699_v2  ;;  %v4770_v7 = vpop.f32.mrb[43].mxu0 }
 0x1fe   : > { %v4840_v8 = vpop.f32.mrb[43].mxu1 }
 0x1ff   : > { %v4839_v9 = vadd.f32 %v4838_v25, %v4769_v6 }
 0x201   : > { %8547 = vmatmul.mubr.f32.vlgmr.msra.gmra.mrb[96].mxu0 %v1556_v57 }
 0x202   : > { %8617 = vmatmul.mubr.f32.vlgmr.msra.gmra.mrb[96].mxu1 %v1563_v58 }
 0x204   : > { %v4908_v10 = vpop.f32.mrb[44].mxu0 }
 0x205   : > { %v4978_v11 = vpop.f32.mrb[44].mxu1  ;;  %v4909_v12 = vadd.f32 %v4908_v10, %v4839_v9  ;;  %v4910_v13 = vpop.f32.mrb[45].mxu0 }
 0x206   : > { %v4980_v14 = vpop.f32.mrb[45].mxu1 }
 0x207   : > { %v4979_v15 = vadd.f32 %v4978_v11, %v4909_v12 }
 0x20c   : > { %v5048_v16 = vpop.f32.mrb[46].mxu0 }
 0x20d   : > { %v5118_v17 = vpop.f32.mrb[46].mxu1  ;;  %v5049_v18 = vadd.f32 %v5048_v16, %v4979_v15  ;;  %v5050_v19 = vpop.f32.mrb[47].mxu0 }
 0x20e   : > { %v5120_v20 = vpop.f32.mrb[47].mxu1 }
 0x20f   : > { %v5119_v21 = vadd.f32 %v5118_v17, %v5049_v18 }
 0x214   : > { %v5188_v22 = vpop.f32.mrb[48].mxu0 }
 0x215   : > { %v5258_v23 = vpop.f32.mrb[48].mxu1  ;;  %v5189_v24 = vadd.f32 %v5188_v22, %v5119_v21  ;;  %v5190_v26 = vpop.f32.mrb[49].mxu0 }
 0x216   : > { %v5260_v27 = vpop.f32.mrb[49].mxu1 }
 0x217   : > { %v5259_v28 = vadd.f32 %v5258_v23, %v5189_v24 }
 0x21c   : > { %v5328_v29 = vpop.f32.mrb[50].mxu0 }
 0x21d   : > { %v5398_v30 = vpop.f32.mrb[50].mxu1  ;;  %v5329_v31 = vadd.f32 %v5328_v29, %v5259_v28  ;;  %v5330_v32 = vpop.f32.mrb[51].mxu0 }
 0x21e   : > { %v5400_v33 = vpop.f32.mrb[51].mxu1 }
 0x21f   : > { %v5399_v34 = vadd.f32 %v5398_v30, %v5329_v31 }
 0x224   : > { %v5468_v35 = vpop.f32.mrb[52].mxu0 }
 0x225   : > { %v5538_v36 = vpop.f32.mrb[52].mxu1  ;;  %v5469_v37 = vadd.f32 %v5468_v35, %v5399_v34  ;;  %v5470_v38 = vpop.f32.mrb[53].mxu0 }
 0x226   : > { %v5540_v39 = vpop.f32.mrb[53].mxu1 }
 0x227   : > { %v5539_v40 = vadd.f32 %v5538_v36, %v5469_v37 }
 0x22c   : > { %v5608_v41 = vpop.f32.mrb[54].mxu0 }
 0x22d   : > { %v5678_v42 = vpop.f32.mrb[54].mxu1  ;;  %v5609_v43 = vadd.f32 %v5608_v41, %v5539_v40  ;;  %v5610_v44 = vpop.f32.mrb[55].mxu0 }
 0x22e   : > { %v5680_v45 = vpop.f32.mrb[55].mxu1 }
 0x22f   : > { %v5679_v46 = vadd.f32 %v5678_v42, %v5609_v43 }
 0x234   : > { %v5748_v47 = vpop.f32.mrb[56].mxu0 }
 0x235   : > { %v5818_v48 = vpop.f32.mrb[56].mxu1  ;;  %v5749_v49 = vadd.f32 %v5748_v47, %v5679_v46  ;;  %v5750_v50 = vpop.f32.mrb[57].mxu0 }
 0x236   : > { %v5820_v51 = vpop.f32.mrb[57].mxu1 }
 0x237   : > { %v5819_v52 = vadd.f32 %v5818_v48, %v5749_v49 }
 0x23c   : > { %v5888_v53 = vpop.f32.mrb[58].mxu0 }
 0x23d   : > { %v5958_v54 = vpop.f32.mrb[58].mxu1  ;;  %v5889_v55 = vadd.f32 %v5888_v53, %v5819_v52  ;;  %v5890_v56 = vpop.f32.mrb[59].mxu0 }
 0x23e   : > { %v5960_v57 = vpop.f32.mrb[59].mxu1 }
 0x23f   : > { %v5959_v58 = vadd.f32 %v5958_v54, %v5889_v55 }
 0x244   : > { %v6028_v59 = vpop.f32.mrb[60].mxu0 }
 0x245   : > { %v6098_v60 = vpop.f32.mrb[60].mxu1  ;;  %v6029_v61 = vadd.f32 %v6028_v59, %v5959_v58  ;;  %v6030_v62 = vpop.f32.mrb[61].mxu0 }
 0x246   : > { %v6100_v63 = vpop.f32.mrb[61].mxu1 }
 0x247   : > { %v6099_v0 = vadd.f32 %v6098_v60, %v6029_v61 }
 0x24c   : > { %v6168_v1 = vpop.f32.mrb[62].mxu0 }
 0x24d   : > { %v6238_v2 = vpop.f32.mrb[62].mxu1  ;;  %v6169_v3 = vadd.f32 %v6168_v1, %v6099_v0  ;;  %v6170_v4 = vpop.f32.mrb[63].mxu0 }
 0x24e   : > { %v6240_v5 = vpop.f32.mrb[63].mxu1 }
 0x24f   : > { %v6239_v25 = vadd.f32 %v6238_v2, %v6169_v3 }
 0x254   : > { %v6308_v6 = vpop.f32.mrb[64].mxu0 }
 0x255   : > { %v6378_v7 = vpop.f32.mrb[64].mxu1  ;;  %v6309_v8 = vadd.f32 %v6308_v6, %v6239_v25  ;;  %v6310_v9 = vpop.f32.mrb[65].mxu0 }
 0x256   : > { %v6380_v10 = vpop.f32.mrb[65].mxu1 }
 0x257   : > { %v6379_v11 = vadd.f32 %v6378_v7, %v6309_v8 }
 0x25c   : > { %v6448_v12 = vpop.f32.mrb[66].mxu0 }
 0x25d   : > { %v6518_v13 = vpop.f32.mrb[66].mxu1  ;;  %v6449_v14 = vadd.f32 %v6448_v12, %v6379_v11  ;;  %v6450_v15 = vpop.f32.mrb[67].mxu0 }
 0x25e   : > { %v6520_v16 = vpop.f32.mrb[67].mxu1 }
 0x25f   : > { %v6519_v17 = vadd.f32 %v6518_v13, %v6449_v14 }
 0x264   : > { %v6588_v18 = vpop.f32.mrb[68].mxu0 }
 0x265   : > { %v6658_v19 = vpop.f32.mrb[68].mxu1  ;;  %v6589_v20 = vadd.f32 %v6588_v18, %v6519_v17  ;;  %v6590_v21 = vpop.f32.mrb[69].mxu0 }
 0x266   : > { %v6660_v22 = vpop.f32.mrb[69].mxu1 }
 0x267   : > { %v6659_v23 = vadd.f32 %v6658_v19, %v6589_v20 }
 0x26c   : > { %v6728_v24 = vpop.f32.mrb[70].mxu0 }
 0x26d   : > { %v6798_v26 = vpop.f32.mrb[70].mxu1  ;;  %v6729_v27 = vadd.f32 %v6728_v24, %v6659_v23  ;;  %v6730_v28 = vpop.f32.mrb[71].mxu0 }
 0x26e   : > { %v6800_v29 = vpop.f32.mrb[71].mxu1 }
 0x26f   : > { %v6799_v30 = vadd.f32 %v6798_v26, %v6729_v27 }
 0x274   : > { %v6868_v31 = vpop.f32.mrb[72].mxu0 }
 0x275   : > { %v6938_v32 = vpop.f32.mrb[72].mxu1  ;;  %v6869_v33 = vadd.f32 %v6868_v31, %v6799_v30  ;;  %v6870_v34 = vpop.f32.mrb[73].mxu0 }
 0x276   : > { %v6940_v35 = vpop.f32.mrb[73].mxu1 }
 0x277   : > { %v6939_v36 = vadd.f32 %v6938_v32, %v6869_v33 }
 0x27c   : > { %v7008_v37 = vpop.f32.mrb[74].mxu0 }
 0x27d   : > { %v7078_v38 = vpop.f32.mrb[74].mxu1  ;;  %v7009_v39 = vadd.f32 %v7008_v37, %v6939_v36  ;;  %v7010_v40 = vpop.f32.mrb[75].mxu0 }
 0x27e   : > { %v7080_v41 = vpop.f32.mrb[75].mxu1 }
 0x27f   : > { %v7079_v42 = vadd.f32 %v7078_v38, %v7009_v39 }
 0x284   : > { %v7148_v43 = vpop.f32.mrb[76].mxu0 }
 0x285   : > { %v7218_v44 = vpop.f32.mrb[76].mxu1  ;;  %v7149_v45 = vadd.f32 %v7148_v43, %v7079_v42  ;;  %v7150_v46 = vpop.f32.mrb[77].mxu0 }
 0x286   : > { %v7220_v47 = vpop.f32.mrb[77].mxu1 }
 0x287   : > { %v7219_v48 = vadd.f32 %v7218_v44, %v7149_v45  ;;  %v242_v44 = vld [vmem:[#allocation8] sm:$0x3] }
 0x28c   : > { %v7288_v49 = vpop.f32.mrb[78].mxu0 }
 0x28d   : > { %v7358_v50 = vpop.f32.mrb[78].mxu1  ;;  %v7289_v51 = vadd.f32 %v7288_v49, %v7219_v48  ;;  %v7290_v52 = vpop.f32.mrb[79].mxu0 }
 0x28e   : > { %v7360_v53 = vpop.f32.mrb[79].mxu1 }
 0x28f   : > { %v7359_v54 = vadd.f32 %v7358_v50, %v7289_v51 }
 0x294   : > { %v7428_v55 = vpop.f32.mrb[80].mxu0 }
 0x295   : > { %v7498_v56 = vpop.f32.mrb[80].mxu1  ;;  %v7429_v57 = vadd.f32 %v7428_v55, %v7359_v54  ;;  %v7430_v58 = vpop.f32.mrb[81].mxu0 }
 0x296   : > { %v7500_v59 = vpop.f32.mrb[81].mxu1 }
 0x297   : > { %v7499_v60 = vadd.f32 %v7498_v56, %v7429_v57 }
 0x29c   : > { %v7568_v61 = vpop.f32.mrb[82].mxu0 }
 0x29d   : > { %v7638_v62 = vpop.f32.mrb[82].mxu1  ;;  %v7569_v63 = vadd.f32 %v7568_v61, %v7499_v60  ;;  %v7570_v0 = vpop.f32.mrb[83].mxu0 }
 0x29e   : > { %v7640_v1 = vpop.f32.mrb[83].mxu1 }
 0x29f   : > { %v7639_v2 = vadd.f32 %v7638_v62, %v7569_v63 }
 0x2a4   : > { %v7708_v3 = vpop.f32.mrb[84].mxu0 }
 0x2a5   : > { %v7778_v4 = vpop.f32.mrb[84].mxu1  ;;  %v7709_v5 = vadd.f32 %v7708_v3, %v7639_v2  ;;  %v7710_v25 = vpop.f32.mrb[85].mxu0 }
 0x2a6   : > { %v7780_v6 = vpop.f32.mrb[85].mxu1 }
 0x2a7   : > { %v7779_v7 = vadd.f32 %v7778_v4, %v7709_v5 }
 0x2ac   : > { %v7848_v8 = vpop.f32.mrb[86].mxu0 }
 0x2ad   : > { %v7918_v9 = vpop.f32.mrb[86].mxu1  ;;  %v7849_v10 = vadd.f32 %v7848_v8, %v7779_v7  ;;  %v7850_v11 = vpop.f32.mrb[87].mxu0 }
 0x2ae   : > { %v7920_v12 = vpop.f32.mrb[87].mxu1 }
 0x2af   : > { %v7919_v13 = vadd.f32 %v7918_v9, %v7849_v10 }
 0x2b4   : > { %v7988_v14 = vpop.f32.mrb[88].mxu0 }
 0x2b5   : > { %v8058_v15 = vpop.f32.mrb[88].mxu1  ;;  %v7989_v16 = vadd.f32 %v7988_v14, %v7919_v13  ;;  %v7990_v17 = vpop.f32.mrb[89].mxu0 }
 0x2b6   : > { %v8060_v18 = vpop.f32.mrb[89].mxu1 }
 0x2b7   : > { %v8059_v19 = vadd.f32 %v8058_v15, %v7989_v16 }
 0x2bc   : > { %v8128_v20 = vpop.f32.mrb[90].mxu0 }
 0x2bd   : > { %v8198_v21 = vpop.f32.mrb[90].mxu1  ;;  %v8129_v22 = vadd.f32 %v8128_v20, %v8059_v19  ;;  %v8130_v23 = vpop.f32.mrb[91].mxu0 }
 0x2be   : > { %v8200_v24 = vpop.f32.mrb[91].mxu1 }
 0x2bf   : > { %v8199_v26 = vadd.f32 %v8198_v21, %v8129_v22 }
 0x2c4   : > { %v8268_v27 = vpop.f32.mrb[92].mxu0 }
 0x2c5   : > { %v8338_v28 = vpop.f32.mrb[92].mxu1  ;;  %v8269_v29 = vadd.f32 %v8268_v27, %v8199_v26  ;;  %v8270_v30 = vpop.f32.mrb[93].mxu0 }
 0x2c6   : > { %v8340_v31 = vpop.f32.mrb[93].mxu1 }
 0x2c7   : > { %v8339_v32 = vadd.f32 %v8338_v28, %v8269_v29 }
 0x2cc   : > { %v8408_v33 = vpop.f32.mrb[94].mxu0 }
 0x2cd   : > { %v8478_v34 = vpop.f32.mrb[94].mxu1  ;;  %v8409_v35 = vadd.f32 %v8408_v33, %v8339_v32  ;;  %v8410_v36 = vpop.f32.mrb[95].mxu0 }
 0x2ce   : > { %v8480_v37 = vpop.f32.mrb[95].mxu1 }
 0x2cf   : > { %v8479_v38 = vadd.f32 %v8478_v34, %v8409_v35 }
 0x2d4   : > { %v8548_v39 = vpop.f32.mrb[96].mxu0 }
 0x2d5   : > { %v8618_v40 = vpop.f32.mrb[96].mxu1  ;;  %v8549_v41 = vadd.f32 %v8548_v39, %v8479_v38  ;;  %v8550_v42 = vpop.f32.mrb[97].mxu0  ;;  %8628 = sbr.rel (%p8743_p12) target bundleno = 1058 (0x422), region = 52 }
 0x2d6   : > { %v8620_v43 = vpop.f32.mrb[97].mxu1 }
 0x2d7   : > { %v8619_v45 = vadd.f32 %v8618_v40, %v8549_v41 }
 0x2d9   : > { %v8622_v46 = vadd.f32 %v8619_v45, %v242_v44 }
 0x2db   : > { %8624 = vst.msk [vmem:[#allocation8] sm:$0x3] %vm8623_vm1, %v8622_v46 }
 0x2e2   : > { %v8629_v47 = vld [vmem:[#allocation8] sm:$0x3] }
 0x2e3   : > { %v8630_v48 = vsel %vm8623_vm1, %v8629_v47, -inf }
 0x2e4   : > { %8631 = vmax.xlane.f32.xlu0 %v8630_v48 }
 0x371   : > { %v8632_v49 = vpop.xlane.xlu0 %8631 }
 0x372   : > { %v8633_v50 = vsub.f32 %v8629_v47, %v8632_v49 }
 0x374   : > { %v8634_v51 = vmul.f32 1.442695, %v8633_v50 }
 0x376   : > { %9261 = vpow2.f32 %v8634_v51 }
 0x380   : > { %v9262_v52 = vpop.eup %9261 }
 0x381   : > { %v8636_v53 = vsel %vm8623_vm1, %v9262_v52, 0.0 }
 0x382   : > { %8637 = vadd.xlane.f32.xlu0 %v8636_v53 }
 0x40f   : > { %v8638_v54 = vpop.xlane.xlu0 %8637 }
 0x410   : > { %9263 = vlog2.f32 %v8638_v54 }
 0x41a   : > { %v9264_v55 = vpop.eup %9263 }
 0x41b   : > { %v8640_v56 = vmul.f32 0.6931472, %v9264_v55 }
 0x41d   : > { %v8641_v57 = vadd.f32 %v8640_v56, %v8632_v49 }
 0x41f   : > { %v8642_v58 = vsub.f32 %v8629_v47, %v8641_v57 }
 0x421   : > { %8643 = vst.msk [vmem:[#allocation8] sm:$0x3] %vm8623_vm1, %v8642_v58 }
 0x422 PF: > { %p9172_p3 = scmp.eq.s32.totalorder %s9474_s16, 1  ;;  %s9434_s21 = smov [#allocation8]  }
 0x423   : > { %s8651_s22 = sshll.u32 %s9434_s21, 4  ;;  %s8652_s22 = int_to_ptr.vmem [resolvable:$true] %s8651_s22 }
 0x424   : > { %s9353_s9 = scalar_lea.vmem %s8652_s22, 32  ;;  %p9360_p13 = scmp.lt.s32.totalorder %s8652_s22, %s8652_s22 }
 0x425   : > { %p9354_p8 = scmp.ne.s32.totalorder %s8652_s22, %s9353_s9  ;;  %p9361_p2 = scmp.lt.s32.totalorder %s9353_s9, %s9353_s9 }
 0x427   : > { %p9355_p0 = pnand %p9354_p8, %p9172_p3  ;;  %p9362_p6 = por %p9361_p2, %p9360_p13 }
 0x429   : > { %p9356_p1 = pneg %p9355_p0 }
 0x42b   : > { %p9363_p9 = pnand %p9362_p6, %p9356_p1 }
 0x42d   : > { %9366 = shalt.err (!%p9363_p9)
}
 0x42e   : > { %s9367_s5 = scalar_lea.hbm %s10218_s3, 32 }
 0x42f   : > { %p9368_p7 = scmp.ne.s32.totalorder %s10218_s3, %s9367_s5  ;;  %p9373_p10 = scmp.lt.u32.totalorder %s9367_s5, %s10218_s3 }
 0x431   : > { %p9369_p5 = pnand %p9368_p7, %p9172_p3 }
 0x433   : > { %p9370_p4 = pneg %p9369_p5 }
 0x435   : > { %p9375_p11 = pnand %p9373_p10, %p9370_p4 }
 0x437   : > { %9378 = shalt.err (!%p9375_p11)
}
 0x438   : > { %9155 = dma.vmem_to_hbm [thread:$0]  (%p9172_p3), %s8652_s22, 32, %s10218_s3, [#allocation4]  }
 0x439   : > { %9408 = dma.done.wait (%p9172_p3), [#allocation4], 32  }
 0x43a   : > { %9410 = vsyncadd (%p9172_p3), [#allocation4], 4294967264 }
 0x43b PF: > { %p17_p12 = scmp.ge.s32.totalorder %s9477_s17, 4   ;;  %s10233_s12 = smov %s9417_s13 }
 0x43c   : > { %s10234_s13 = smov %s9421_s14  ;;  %s10235_s14 = smov %s9487_s20 }
 0x43d   : > { %s10236_s15 = smov %s9477_s17  ;;  %19 = sbr.rel (!%p17_p12) target bundleno = 6 (0x6), region = 94 }
 0x444   :  { %8664 = vsyncpa [#allocation3], 1 }
 0x445   :  { %8666 = vsyncpa [#allocation3 + $0x1], 1 }
 0x446   :  { %8667 = vsyncpa [#allocation6], 1 }
 0x447   :  { %8669 = vsyncpa [#allocation6 + $0x1], 1 }
 0x448   :  { %8670 = vsyncpa [#allocation4], 1 }
 0x449   :  { %8672 = vsyncpa [#allocation4 + $0x1], 1 }

</bundles_post_ra>
